<compile_context>
chip_gen: v6e
topology: v6e:2x2x1
jax: 0.10.0
libtpu: 0.0.40
codegen_flags: <defaults>
</compile_context>

<pallas_src>
import functools

import numpy as np
import jax
import jax.numpy as jnp
from jax.experimental import pallas as pl
from jax.experimental.pallas import tpu as pltpu


# ----------------------------------------------------------------------------
# Constant JPEG quantization tables (same values as the PyTorch module/utils).
# ----------------------------------------------------------------------------
_Y_TABLE = np.array(
    [[16, 11, 10, 16, 24, 40, 51, 61],
     [12, 12, 14, 19, 26, 58, 60, 55],
     [14, 13, 16, 24, 40, 57, 69, 56],
     [14, 17, 22, 29, 51, 87, 80, 62],
     [18, 22, 37, 56, 68, 109, 103, 77],
     [24, 35, 55, 64, 81, 104, 113, 92],
     [49, 64, 78, 87, 103, 121, 120, 101],
     [72, 92, 95, 98, 112, 100, 103, 99]], dtype=np.float32).T

_C_TABLE = np.full((8, 8), 99.0, dtype=np.float32)
_C_TABLE[:4, :4] = np.array(
    [[17, 18, 24, 47], [18, 21, 26, 66],
     [24, 26, 56, 99], [47, 66, 99, 99]], dtype=np.float32).T


def _idct_basis() -> np.ndarray:
    """basis[x, y, u, v] = cos((2u+1)x pi/16) * cos((2v+1)y pi/16)."""
    xs = np.arange(8, dtype=np.float64)[:, None]
    us = np.arange(8, dtype=np.float64)[None, :]
    c = np.cos((2.0 * us + 1.0) * xs * np.pi / 16.0)        # c[x, u]
    return np.einsum("xu,yv->xyuv", c, c)


def _fused_idct_matrix_f64(table: np.ndarray, factor: float) -> np.ndarray:
    """(64, 64) float64 matrix folding dequant, alpha scaling and the IDCT.

    out[b, n, u, v] = sum_{x,y} patch[b, n, x, y] * fused[(x,y), (u,v)] + 128
    """
    alpha_vec = np.array([1.0 / np.sqrt(2.0)] + [1.0] * 7, dtype=np.float64)
    alpha = np.outer(alpha_vec, alpha_vec)
    scale = 0.25 * table.astype(np.float64) * float(factor) * alpha   # on (x, y)
    fused = scale[:, :, None, None] * _idct_basis()
    return fused.reshape(64, 64)


def _fused_group_matrix(table: np.ndarray, factor: float, g: int) -> np.ndarray:
    """(64g, 64g) block-diagonal matrix with merge-friendly output columns.

    Input row packs g horizontally-adjacent 8x8 coefficient blocks
    (column k = j*64 + x*8 + y).  Output column u*8g + j*8 + v is the
    already-merged 8g-wide strip of spatial row u for those g blocks, so the
    kernel only needs a trivial row-major reshape to produce plane layout.
    """
    f64 = _fused_idct_matrix_f64(table, factor)
    big = np.zeros((64 * g, 64 * g), dtype=np.float64)
    for j in range(g):
        for u in range(8):
            big[j * 64:(j + 1) * 64,
                u * 8 * g + j * 8: u * 8 * g + (j + 1) * 8] = f64[:, u * 8:(u + 1) * 8]
    return big.astype(np.float32)


def _group_size(w: int) -> int:
    nbc = w // 8
    for g in (4, 2, 1):
        if nbc % g == 0:
            return g
    return 1


# ----------------------------------------------------------------------------
# Kernel 1: dequantize + 8x8 IDCT + block merge, writing plane-layout tiles.
# ----------------------------------------------------------------------------
def _dequant_idct_merge_kernel(coef_ref, mat_ref, out_ref, *, g):
    # coef_ref: (rows, 64*g) f32  -- g packed blocks per row, lane-dense
    # mat_ref:  (64*g, 64*g) f32  -- permuted block-diagonal fused matrix
    # out_ref:  (rbs, 8, w) f32   -- rbs whole image block-rows in plane layout
    res = jnp.dot(coef_ref[...], mat_ref[...],
                  preferred_element_type=jnp.float32) + 128.0
    rbs = out_ref.shape[0]
    w = out_ref.shape[2]
    for u in range(8):
        # 8g-wide merged strip of spatial row u for every packed group.
        strip = res[:, u * 8 * g:(u + 1) * 8 * g]        # (rbs * (w // (8g)), 8g)
        out_ref[:, u, :] = strip.reshape(rbs, w)         # row-major merge -> (rbs, w)


def _dequant_idct_to_plane(patches, fused_mat, h, w, g):
    """(B, N, 8, 8) quantized blocks -> (B, h, w) spatial plane (+128)."""
    B = patches.shape[0]
    nbr, nbc = h // 8, w // 8
    K = nbc // g                                    # packed rows per block-row
    total_brows = B * nbr
    total_rows = total_brows * K

    # Free (contiguous) reshape: g adjacent blocks packed per matmul row.
    coef = patches.reshape(total_rows, 64 * g).astype(jnp.float32)

    # ~2 MiB input tile per step; whole image block-rows per tile; first dim of
    # the input block is a multiple of 8 (or the full extent) for legality.
    target_rows = max(1, (2 * 1024 * 1024) // (64 * g * 4))
    rbs = max(8, (target_rows // max(K, 1)) // 8 * 8)
    if rbs >= total_brows:
        rbs = total_brows
    rows_per_step = rbs * K
    grid = (pl.cdiv(total_brows, rbs),)

    out = pl.pallas_call(
        functools.partial(_dequant_idct_merge_kernel, g=g),
        out_shape=jax.ShapeDtypeStruct((total_brows, 8, w), jnp.float32),
        grid=grid,
        in_specs=[
            pl.BlockSpec((rows_per_step, 64 * g), lambda i: (i, 0)),
            pl.BlockSpec((64 * g, 64 * g), lambda i: (0, 0)),
        ],
        out_specs=pl.BlockSpec((rbs, 8, w), lambda i: (i, 0, 0)),
        compiler_params=pltpu.CompilerParams(
            dimension_semantics=("parallel",),
            vmem_limit_bytes=40 * 1024 * 1024),
    )(coef, fused_mat)
    # (B*nbr, 8, w) -> (B, h, w) is a contiguous (free) reshape.
    return out.reshape(B, h, w)


# ----------------------------------------------------------------------------
# Kernel 2: fused 2x chroma upsample + YCbCr -> RGB + clamp + /255 (NCHW out).
# ----------------------------------------------------------------------------
def _ycbcr_to_rgb_kernel(y_ref, cb_ref, cr_ref, out_ref):
    # y_ref:        (1, th, W)        full-resolution luma tile
    # cb_ref/cr_ref:(1, th//2, W//2)  half-resolution chroma tiles
    # out_ref:      (1, 3, th, W)     RGB in [0, 1]
    y = y_ref[0]

    def up2(x):  # nearest-neighbour 2x upsample (lane then sublane repeat)
        x = jnp.repeat(x, 2, axis=1)
        x = jnp.repeat(x, 2, axis=0)
        return x

    cb = up2(cb_ref[0]) - 128.0
    cr = up2(cr_ref[0]) - 128.0
    r = y + 1.402 * cr
    g = y - 0.344136 * cb - 0.714136 * cr
    b = y + 1.772 * cb
    inv255 = 1.0 / 255.0
    out_ref[0, 0] = jnp.clip(r, 0.0, 255.0) * inv255
    out_ref[0, 1] = jnp.clip(g, 0.0, 255.0) * inv255
    out_ref[0, 2] = jnp.clip(b, 0.0, 255.0) * inv255


def _pick_row_tile(H: int, W: int) -> int:
    """Output rows per colour-conversion tile (multiple of 16, or full H).

    Per-step buffers (y + half-res cb/cr + 3 RGB channels) double-buffered
    cost ~36 * th * W bytes; budget ~20 MiB so sizing is safe even against
    v7x's 64 MiB physical VMEM while keeping 256-512 row tiles when possible.
    """
    if H <= 256:
        return H
    max_th = max(16, (20 * 1024 * 1024) // (36 * W))
    th = min(512, max_th, H)
    if th >= H:
        return H
    return max(16, (th // 16) * 16)


def _ycbcr_to_rgb(y_plane, cb_plane, cr_plane):
    B, H, W = y_plane.shape
    th = _pick_row_tile(H, W)
    return pl.pallas_call(
        _ycbcr_to_rgb_kernel,
        out_shape=jax.ShapeDtypeStruct((B, 3, H, W), jnp.float32),
        grid=(B, pl.cdiv(H, th)),                       # ragged last tile is fine
        in_specs=[
            pl.BlockSpec((1, th, W), lambda b, r: (b, r, 0)),
            pl.BlockSpec((1, th // 2, W // 2), lambda b, r: (b, r, 0)),
            pl.BlockSpec((1, th // 2, W // 2), lambda b, r: (b, r, 0)),
        ],
        out_specs=pl.BlockSpec((1, 3, th, W), lambda b, r: (b, 0, r, 0)),
        compiler_params=pltpu.CompilerParams(
            dimension_semantics=("parallel", "parallel"),
            vmem_limit_bytes=40 * 1024 * 1024),
    )(y_plane, cb_plane, cr_plane)


# ----------------------------------------------------------------------------
# Full pipeline.
# ----------------------------------------------------------------------------
@functools.partial(jax.jit, static_argnames=("height", "width", "factor"))
def decompress_jpeg(y, cb, cr, *, height, width, factor=1.0):
    """Forward pass of `decompress_jpeg_`: returns (B, 3, height, width) in [0, 1]."""
    gy = _group_size(width)
    gc = _group_size(width // 2)
    y_mat = jnp.asarray(_fused_group_matrix(_Y_TABLE, factor, gy))
    c_mat = jnp.asarray(_fused_group_matrix(_C_TABLE, factor, gc))

    # Dequant + IDCT + block merge fused; outputs are already plane layout.
    # TODO(synk): cb/cr use separate pallas_calls; concatenating them would
    # save one launch but costs an extra HBM pass for the concat.
    y_img = _dequant_idct_to_plane(y, y_mat, height, width, gy)
    cb_img = _dequant_idct_to_plane(cb, c_mat, height // 2, width // 2, gc)
    cr_img = _dequant_idct_to_plane(cr, c_mat, height // 2, width // 2, gc)

    # Chroma upsampling is fused into the colour kernel (half-res inputs).
    return _ycbcr_to_rgb(y_img, cb_img, cr_img)


# ----------------------------------------------------------------------------
# Pure numpy (float64) reference mirroring the PyTorch forward, for checking.
# ----------------------------------------------------------------------------
def _reference_numpy(y, cb, cr, height, width, factor=1.0):
    y = np.asarray(y, dtype=np.float64)
    cb = np.asarray(cb, dtype=np.float64)
    cr = np.asarray(cr, dtype=np.float64)
    alpha_vec = np.array([1.0 / np.sqrt(2.0)] + [1.0] * 7, dtype=np.float64)
    alpha = np.outer(alpha_vec, alpha_vec)
    basis = _idct_basis()

    def channel(p, table, h, w):
        comp = p * (table.astype(np.float64) * factor)
        comp = comp * alpha
        res = 0.25 * np.tensordot(comp, basis, axes=2) + 128.0
        B = p.shape[0]
        return (res.reshape(B, h // 8, w // 8, 8, 8)
                .transpose(0, 1, 3, 2, 4).reshape(B, h, w))

    y_img = channel(y, _Y_TABLE, height, width)
    cb_img = channel(cb, _C_TABLE, height // 2, width // 2)
    cr_img = channel(cr, _C_TABLE, height // 2, width // 2)
    cb_up = np.repeat(np.repeat(cb_img, 2, axis=1), 2, axis=2)
    cr_up = np.repeat(np.repeat(cr_img, 2, axis=1), 2, axis=2)

    image = np.stack([y_img, cb_up, cr_up], axis=-1)            # (B, H, W, 3)
    shift = np.array([0.0, -128.0, -128.0])
    matrix = np.array([[1.0, 0.0, 1.402],
                       [1.0, -0.344136, -0.714136],
                       [1.0, 1.772, 0.0]], dtype=np.float64).T
    rgb = np.tensordot(image + shift, matrix, axes=1)           # (B, H, W, 3)
    rgb = np.transpose(rgb, (0, 3, 1, 2))                       # (B, 3, H, W)
    rgb = np.clip(rgb, 0.0, 255.0)
    return rgb / 255.0


def _run_case(key, B, H, W):
    k_y, k_cb, k_cr = jax.random.split(key, 3)
    n_y = (H // 8) * (W // 8)
    n_c = (H // 16) * (W // 16)
    # Small integer-valued "quantized DCT coefficients".
    y = jnp.round(jax.random.uniform(k_y, (B, n_y, 8, 8), minval=-3.0, maxval=3.0))
    cb = jnp.round(jax.random.uniform(k_cb, (B, n_c, 8, 8), minval=-3.0, maxval=3.0))
    cr = jnp.round(jax.random.uniform(k_cr, (B, n_c, 8, 8), minval=-3.0, maxval=3.0))

    out = decompress_jpeg(y, cb, cr, height=H, width=W, factor=1.0)
    out = jax.block_until_ready(out)
    assert out.shape == (B, 3, H, W), out.shape

    ref = _reference_numpy(y, cb, cr, H, W, factor=1.0)
    max_err = float(np.max(np.abs(np.asarray(out, dtype=np.float64) - ref)))
    assert max_err < 2.5e-2, f"max abs error vs reference ({B}x{H}x{W}): {max_err}"


if __name__ == "__main__":
    key = jax.random.PRNGKey(0)
    k0, k1 = jax.random.split(key)
    _run_case(k0, B=2, H=16, W=16)   # tiny case (single-tile path)
    _run_case(k1, B=1, H=64, W=64)   # exercises multi-group merge path
    print("KERNEL_OK")
</pallas_src>

<mosaic_0001>
module attributes {stable_mosaic.version = 11 : i64} {
  func.func @_dequant_idct_merge_kernel(%arg0: i32, %arg1: memref<2x64xf32, #tpu.memory_space<vmem>>, %arg2: memref<64x64xf32, #tpu.memory_space<vmem>>, %arg3: memref<2x8x8xf32, #tpu.memory_space<vmem>>) attributes {dimension_semantics = [#tpu.dimension_semantics<parallel>], iteration_bounds = array<i64: 1>, scalar_prefetch = 0 : i64, scratch_operands = 0 : i64, tpu.core_type = #tpu.core_type<tc>, window_params = [{transform_indices = @transform_0, window_bounds = array<i64: 2, 64>}, {pipeline_mode = #tpu.pipeline_mode<synchronous>, transform_indices = @transform_1, window_bounds = array<i64: 64, 64>}, {transform_indices = @transform_2, window_bounds = array<i64: 2, 8, 8>}]} {
    %c0 = arith.constant 0 : index
    %c0_0 = arith.constant 0 : index
    %0 = vector.load %arg1[%c0, %c0_0] : memref<2x64xf32, #tpu.memory_space<vmem>>, vector<2x64xf32>
    %c0_1 = arith.constant 0 : index
    %c0_2 = arith.constant 0 : index
    %1 = vector.load %arg2[%c0_1, %c0_2] : memref<64x64xf32, #tpu.memory_space<vmem>>, vector<64x64xf32>
    %cst = arith.constant dense<0.000000e+00> : vector<2x64xf32>
    %2 = tpu.matmul %0, %1, %cst {dimension_numbers = #tpu.dot_dimension_numbers<[1], [0], [0], [1], [0, 0, 1, 1], [], []>} : vector<2x64xf32>, vector<64x64xf32>, vector<2x64xf32> -> vector<2x64xf32>
    %cst_3 = arith.constant 1.280000e+02 : f32
    %3 = vector.broadcast %cst_3 : f32 to vector<2x64xf32>
    %4 = arith.addf %2, %3 : vector<2x64xf32>
    %5 = vector.extract_strided_slice %4 {offsets = [0, 0], sizes = [2, 8], strides = [1, 1]} : vector<2x64xf32> to vector<2x8xf32>
    %c0_4 = arith.constant 0 : index
    %c0_5 = arith.constant 0 : index
    %c0_6 = arith.constant 0 : index
    %6 = vector.load %arg3[%c0_4, %c0_5, %c0_6] : memref<2x8x8xf32, #tpu.memory_space<vmem>>, vector<2x1x8xf32>
    %7 = vector.shape_cast %6 : vector<2x1x8xf32> to vector<2x8xf32>
    %8 = vector.shape_cast %5 : vector<2x8xf32> to vector<2x1x8xf32>
    tpu.vector_store %arg3[%c0_4, %c0_5, %c0_6], %8 {strides = array<i32>} : memref<2x8x8xf32, #tpu.memory_space<vmem>>, vector<2x1x8xf32>,
    %9 = vector.extract_strided_slice %4 {offsets = [0, 8], sizes = [2, 8], strides = [1, 1]} : vector<2x64xf32> to vector<2x8xf32>
    %c0_7 = arith.constant 0 : index
    %c1 = arith.constant 1 : index
    %c0_8 = arith.constant 0 : index
    %10 = vector.load %arg3[%c0_7, %c1, %c0_8] : memref<2x8x8xf32, #tpu.memory_space<vmem>>, vector<2x1x8xf32>
    %11 = vector.shape_cast %10 : vector<2x1x8xf32> to vector<2x8xf32>
    %12 = vector.shape_cast %9 : vector<2x8xf32> to vector<2x1x8xf32>
    tpu.vector_store %arg3[%c0_7, %c1, %c0_8], %12 {strides = array<i32>} : memref<2x8x8xf32, #tpu.memory_space<vmem>>, vector<2x1x8xf32>,
    %13 = vector.extract_strided_slice %4 {offsets = [0, 16], sizes = [2, 8], strides = [1, 1]} : vector<2x64xf32> to vector<2x8xf32>
    %c0_9 = arith.constant 0 : index
    %c2 = arith.constant 2 : index
    %c0_10 = arith.constant 0 : index
    %14 = vector.load %arg3[%c0_9, %c2, %c0_10] : memref<2x8x8xf32, #tpu.memory_space<vmem>>, vector<2x1x8xf32>
    %15 = vector.shape_cast %14 : vector<2x1x8xf32> to vector<2x8xf32>
    %16 = vector.shape_cast %13 : vector<2x8xf32> to vector<2x1x8xf32>
    tpu.vector_store %arg3[%c0_9, %c2, %c0_10], %16 {strides = array<i32>} : memref<2x8x8xf32, #tpu.memory_space<vmem>>, vector<2x1x8xf32>,
    %17 = vector.extract_strided_slice %4 {offsets = [0, 24], sizes = [2, 8], strides = [1, 1]} : vector<2x64xf32> to vector<2x8xf32>
    %c0_11 = arith.constant 0 : index
    %c3 = arith.constant 3 : index
    %c0_12 = arith.constant 0 : index
    %18 = vector.load %arg3[%c0_11, %c3, %c0_12] : memref<2x8x8xf32, #tpu.memory_space<vmem>>, vector<2x1x8xf32>
    %19 = vector.shape_cast %18 : vector<2x1x8xf32> to vector<2x8xf32>
    %20 = vector.shape_cast %17 : vector<2x8xf32> to vector<2x1x8xf32>
    tpu.vector_store %arg3[%c0_11, %c3, %c0_12], %20 {strides = array<i32>} : memref<2x8x8xf32, #tpu.memory_space<vmem>>, vector<2x1x8xf32>,
    %21 = vector.extract_strided_slice %4 {offsets = [0, 32], sizes = [2, 8], strides = [1, 1]} : vector<2x64xf32> to vector<2x8xf32>
    %c0_13 = arith.constant 0 : index
    %c4 = arith.constant 4 : index
    %c0_14 = arith.constant 0 : index
    %22 = vector.load %arg3[%c0_13, %c4, %c0_14] : memref<2x8x8xf32, #tpu.memory_space<vmem>>, vector<2x1x8xf32>
    %23 = vector.shape_cast %22 : vector<2x1x8xf32> to vector<2x8xf32>
    %24 = vector.shape_cast %21 : vector<2x8xf32> to vector<2x1x8xf32>
    tpu.vector_store %arg3[%c0_13, %c4, %c0_14], %24 {strides = array<i32>} : memref<2x8x8xf32, #tpu.memory_space<vmem>>, vector<2x1x8xf32>,
    %25 = vector.extract_strided_slice %4 {offsets = [0, 40], sizes = [2, 8], strides = [1, 1]} : vector<2x64xf32> to vector<2x8xf32>
    %c0_15 = arith.constant 0 : index
    %c5 = arith.constant 5 : index
    %c0_16 = arith.constant 0 : index
    %26 = vector.load %arg3[%c0_15, %c5, %c0_16] : memref<2x8x8xf32, #tpu.memory_space<vmem>>, vector<2x1x8xf32>
    %27 = vector.shape_cast %26 : vector<2x1x8xf32> to vector<2x8xf32>
    %28 = vector.shape_cast %25 : vector<2x8xf32> to vector<2x1x8xf32>
    tpu.vector_store %arg3[%c0_15, %c5, %c0_16], %28 {strides = array<i32>} : memref<2x8x8xf32, #tpu.memory_space<vmem>>, vector<2x1x8xf32>,
    %29 = vector.extract_strided_slice %4 {offsets = [0, 48], sizes = [2, 8], strides = [1, 1]} : vector<2x64xf32> to vector<2x8xf32>
    %c0_17 = arith.constant 0 : index
    %c6 = arith.constant 6 : index
    %c0_18 = arith.constant 0 : index
    %30 = vector.load %arg3[%c0_17, %c6, %c0_18] : memref<2x8x8xf32, #tpu.memory_space<vmem>>, vector<2x1x8xf32>
    %31 = vector.shape_cast %30 : vector<2x1x8xf32> to vector<2x8xf32>
    %32 = vector.shape_cast %29 : vector<2x8xf32> to vector<2x1x8xf32>
    tpu.vector_store %arg3[%c0_17, %c6, %c0_18], %32 {strides = array<i32>} : memref<2x8x8xf32, #tpu.memory_space<vmem>>, vector<2x1x8xf32>,
    %33 = vector.extract_strided_slice %4 {offsets = [0, 56], sizes = [2, 8], strides = [1, 1]} : vector<2x64xf32> to vector<2x8xf32>
    %c0_19 = arith.constant 0 : index
    %c7 = arith.constant 7 : index
    %c0_20 = arith.constant 0 : index
    %34 = vector.load %arg3[%c0_19, %c7, %c0_20] : memref<2x8x8xf32, #tpu.memory_space<vmem>>, vector<2x1x8xf32>
    %35 = vector.shape_cast %34 : vector<2x1x8xf32> to vector<2x8xf32>
    %36 = vector.shape_cast %33 : vector<2x8xf32> to vector<2x1x8xf32>
    tpu.vector_store %arg3[%c0_19, %c7, %c0_20], %36 {strides = array<i32>} : memref<2x8x8xf32, #tpu.memory_space<vmem>>, vector<2x1x8xf32>,
    return
  }
  func.func @transform_0(%arg0: i32) -> (i32, i32) {
    %c0_i32 = arith.constant 0 : i32
    %c0_i32_0 = arith.constant 0 : i32
    return %arg0, %c0_i32 : i32, i32
  }
  func.func @transform_1(%arg0: i32) -> (i32, i32) {
    %c0_i32 = arith.constant 0 : i32
    %c0_i32_0 = arith.constant 0 : i32
    %c0_i32_1 = arith.constant 0 : i32
    return %c0_i32, %c0_i32_0 : i32, i32
  }
  func.func @transform_2(%arg0: i32) -> (i32, i32, i32) {
    %c0_i32 = arith.constant 0 : i32
    %c0_i32_0 = arith.constant 0 : i32
    %c0_i32_1 = arith.constant 0 : i32
    return %arg0, %c0_i32, %c0_i32_0 : i32, i32, i32
  }
}

module attributes {stable_mosaic.version = 11 : i64} {
  func.func @_dequant_idct_merge_kernel(%arg0: i32, %arg1: memref<4x128xf32, #tpu.memory_space<vmem>>, %arg2: memref<128x128xf32, #tpu.memory_space<vmem>>, %arg3: memref<4x8x16xf32, #tpu.memory_space<vmem>>) attributes {dimension_semantics = [#tpu.dimension_semantics<parallel>], iteration_bounds = array<i64: 1>, scalar_prefetch = 0 : i64, scratch_operands = 0 : i64, tpu.core_type = #tpu.core_type<tc>, window_params = [{transform_indices = @transform_0, window_bounds = array<i64: 4, 128>}, {pipeline_mode = #tpu.pipeline_mode<synchronous>, transform_indices = @transform_1, window_bounds = array<i64: 128, 128>}, {transform_indices = @transform_2, window_bounds = array<i64: 4, 8, 16>}]} {
    %c0 = arith.constant 0 : index
    %c0_0 = arith.constant 0 : index
    %0 = vector.load %arg1[%c0, %c0_0] : memref<4x128xf32, #tpu.memory_space<vmem>>, vector<4x128xf32>
    %c0_1 = arith.constant 0 : index
    %c0_2 = arith.constant 0 : index
    %1 = vector.load %arg2[%c0_1, %c0_2] : memref<128x128xf32, #tpu.memory_space<vmem>>, vector<128x128xf32>
    %cst = arith.constant dense<0.000000e+00> : vector<4x128xf32>
    %2 = tpu.matmul %0, %1, %cst {dimension_numbers = #tpu.dot_dimension_numbers<[1], [0], [0], [1], [0, 0, 1, 1], [], []>} : vector<4x128xf32>, vector<128x128xf32>, vector<4x128xf32> -> vector<4x128xf32>
    %cst_3 = arith.constant 1.280000e+02 : f32
    %3 = vector.broadcast %cst_3 : f32 to vector<4x128xf32>
    %4 = arith.addf %2, %3 : vector<4x128xf32>
    %5 = vector.extract_strided_slice %4 {offsets = [0, 0], sizes = [4, 16], strides = [1, 1]} : vector<4x128xf32> to vector<4x16xf32>
    %c0_4 = arith.constant 0 : index
    %c0_5 = arith.constant 0 : index
    %c0_6 = arith.constant 0 : index
    %6 = vector.load %arg3[%c0_4, %c0_5, %c0_6] : memref<4x8x16xf32, #tpu.memory_space<vmem>>, vector<4x1x16xf32>
    %7 = vector.shape_cast %6 : vector<4x1x16xf32> to vector<4x16xf32>
    %8 = vector.shape_cast %5 : vector<4x16xf32> to vector<4x1x16xf32>
    tpu.vector_store %arg3[%c0_4, %c0_5, %c0_6], %8 {strides = array<i32>} : memref<4x8x16xf32, #tpu.memory_space<vmem>>, vector<4x1x16xf32>,
    %9 = vector.extract_strided_slice %4 {offsets = [0, 16], sizes = [4, 16], strides = [1, 1]} : vector<4x128xf32> to vector<4x16xf32>
    %c0_7 = arith.constant 0 : index
    %c1 = arith.constant 1 : index
    %c0_8 = arith.constant 0 : index
    %10 = vector.load %arg3[%c0_7, %c1, %c0_8] : memref<4x8x16xf32, #tpu.memory_space<vmem>>, vector<4x1x16xf32>
    %11 = vector.shape_cast %10 : vector<4x1x16xf32> to vector<4x16xf32>
    %12 = vector.shape_cast %9 : vector<4x16xf32> to vector<4x1x16xf32>
    tpu.vector_store %arg3[%c0_7, %c1, %c0_8], %12 {strides = array<i32>} : memref<4x8x16xf32, #tpu.memory_space<vmem>>, vector<4x1x16xf32>,
    %13 = vector.extract_strided_slice %4 {offsets = [0, 32], sizes = [4, 16], strides = [1, 1]} : vector<4x128xf32> to vector<4x16xf32>
    %c0_9 = arith.constant 0 : index
    %c2 = arith.constant 2 : index
    %c0_10 = arith.constant 0 : index
    %14 = vector.load %arg3[%c0_9, %c2, %c0_10] : memref<4x8x16xf32, #tpu.memory_space<vmem>>, vector<4x1x16xf32>
    %15 = vector.shape_cast %14 : vector<4x1x16xf32> to vector<4x16xf32>
    %16 = vector.shape_cast %13 : vector<4x16xf32> to vector<4x1x16xf32>
    tpu.vector_store %arg3[%c0_9, %c2, %c0_10], %16 {strides = array<i32>} : memref<4x8x16xf32, #tpu.memory_space<vmem>>, vector<4x1x16xf32>,
    %17 = vector.extract_strided_slice %4 {offsets = [0, 48], sizes = [4, 16], strides = [1, 1]} : vector<4x128xf32> to vector<4x16xf32>
    %c0_11 = arith.constant 0 : index
    %c3 = arith.constant 3 : index
    %c0_12 = arith.constant 0 : index
    %18 = vector.load %arg3[%c0_11, %c3, %c0_12] : memref<4x8x16xf32, #tpu.memory_space<vmem>>, vector<4x1x16xf32>
    %19 = vector.shape_cast %18 : vector<4x1x16xf32> to vector<4x16xf32>
    %20 = vector.shape_cast %17 : vector<4x16xf32> to vector<4x1x16xf32>
    tpu.vector_store %arg3[%c0_11, %c3, %c0_12], %20 {strides = array<i32>} : memref<4x8x16xf32, #tpu.memory_space<vmem>>, vector<4x1x16xf32>,
    %21 = vector.extract_strided_slice %4 {offsets = [0, 64], sizes = [4, 16], strides = [1, 1]} : vector<4x128xf32> to vector<4x16xf32>
    %c0_13 = arith.constant 0 : index
    %c4 = arith.constant 4 : index
    %c0_14 = arith.constant 0 : index
    %22 = vector.load %arg3[%c0_13, %c4, %c0_14] : memref<4x8x16xf32, #tpu.memory_space<vmem>>, vector<4x1x16xf32>
    %23 = vector.shape_cast %22 : vector<4x1x16xf32> to vector<4x16xf32>
    %24 = vector.shape_cast %21 : vector<4x16xf32> to vector<4x1x16xf32>
    tpu.vector_store %arg3[%c0_13, %c4, %c0_14], %24 {strides = array<i32>} : memref<4x8x16xf32, #tpu.memory_space<vmem>>, vector<4x1x16xf32>,
    %25 = vector.extract_strided_slice %4 {offsets = [0, 80], sizes = [4, 16], strides = [1, 1]} : vector<4x128xf32> to vector<4x16xf32>
    %c0_15 = arith.constant 0 : index
    %c5 = arith.constant 5 : index
    %c0_16 = arith.constant 0 : index
    %26 = vector.load %arg3[%c0_15, %c5, %c0_16] : memref<4x8x16xf32, #tpu.memory_space<vmem>>, vector<4x1x16xf32>
    %27 = vector.shape_cast %26 : vector<4x1x16xf32> to vector<4x16xf32>
    %28 = vector.shape_cast %25 : vector<4x16xf32> to vector<4x1x16xf32>
    tpu.vector_store %arg3[%c0_15, %c5, %c0_16], %28 {strides = array<i32>} : memref<4x8x16xf32, #tpu.memory_space<vmem>>, vector<4x1x16xf32>,
    %29 = vector.extract_strided_slice %4 {offsets = [0, 96], sizes = [4, 16], strides = [1, 1]} : vector<4x128xf32> to vector<4x16xf32>
    %c0_17 = arith.constant 0 : index
    %c6 = arith.constant 6 : index
    %c0_18 = arith.constant 0 : index
    %30 = vector.load %arg3[%c0_17, %c6, %c0_18] : memref<4x8x16xf32, #tpu.memory_space<vmem>>, vector<4x1x16xf32>
    %31 = vector.shape_cast %30 : vector<4x1x16xf32> to vector<4x16xf32>
    %32 = vector.shape_cast %29 : vector<4x16xf32> to vector<4x1x16xf32>
    tpu.vector_store %arg3[%c0_17, %c6, %c0_18], %32 {strides = array<i32>} : memref<4x8x16xf32, #tpu.memory_space<vmem>>, vector<4x1x16xf32>,
    %33 = vector.extract_strided_slice %4 {offsets = [0, 112], sizes = [4, 16], strides = [1, 1]} : vector<4x128xf32> to vector<4x16xf32>
    %c0_19 = arith.constant 0 : index
    %c7 = arith.constant 7 : index
    %c0_20 = arith.constant 0 : index
    %34 = vector.load %arg3[%c0_19, %c7, %c0_20] : memref<4x8x16xf32, #tpu.memory_space<vmem>>, vector<4x1x16xf32>
    %35 = vector.shape_cast %34 : vector<4x1x16xf32> to vector<4x16xf32>
    %36 = vector.shape_cast %33 : vector<4x16xf32> to vector<4x1x16xf32>
    tpu.vector_store %arg3[%c0_19, %c7, %c0_20], %36 {strides = array<i32>} : memref<4x8x16xf32, #tpu.memory_space<vmem>>, vector<4x1x16xf32>,
    return
  }
  func.func @transform_0(%arg0: i32) -> (i32, i32) {
    %c0_i32 = arith.constant 0 : i32
    %c0_i32_0 = arith.constant 0 : i32
    return %arg0, %c0_i32 : i32, i32
  }
  func.func @transform_1(%arg0: i32) -> (i32, i32) {
    %c0_i32 = arith.constant 0 : i32
    %c0_i32_0 = arith.constant 0 : i32
    %c0_i32_1 = arith.constant 0 : i32
    return %c0_i32, %c0_i32_0 : i32, i32
  }
  func.func @transform_2(%arg0: i32) -> (i32, i32, i32) {
    %c0_i32 = arith.constant 0 : i32
    %c0_i32_0 = arith.constant 0 : i32
    %c0_i32_1 = arith.constant 0 : i32
    return %arg0, %c0_i32, %c0_i32_0 : i32, i32, i32
  }
}

module attributes {stable_mosaic.version = 11 : i64} {
  func.func @_ycbcr_to_rgb_kernel(%arg0: i32, %arg1: i32, %arg2: memref<1x16x16xf32, #tpu.memory_space<vmem>>, %arg3: memref<1x8x8xf32, #tpu.memory_space<vmem>>, %arg4: memref<1x8x8xf32, #tpu.memory_space<vmem>>, %arg5: memref<1x3x16x16xf32, #tpu.memory_space<vmem>>) attributes {dimension_semantics = [#tpu.dimension_semantics<parallel>, #tpu.dimension_semantics<parallel>], iteration_bounds = array<i64: 2, 1>, scalar_prefetch = 0 : i64, scratch_operands = 0 : i64, tpu.core_type = #tpu.core_type<tc>, window_params = [{transform_indices = @transform_0, window_bounds = array<i64: 1, 16, 16>}, {transform_indices = @transform_1, window_bounds = array<i64: 1, 8, 8>}, {transform_indices = @transform_2, window_bounds = array<i64: 1, 8, 8>}, {transform_indices = @transform_3, window_bounds = array<i64: 1, 3, 16, 16>}]} {
    %c0 = arith.constant 0 : index
    %c0_0 = arith.constant 0 : index
    %c0_1 = arith.constant 0 : index
    %0 = vector.load %arg2[%c0, %c0_0, %c0_1] : memref<1x16x16xf32, #tpu.memory_space<vmem>>, vector<1x16x16xf32>
    %1 = vector.shape_cast %0 : vector<1x16x16xf32> to vector<16x16xf32>
    %c0_2 = arith.constant 0 : index
    %c0_3 = arith.constant 0 : index
    %c0_4 = arith.constant 0 : index
    %2 = vector.load %arg3[%c0_2, %c0_3, %c0_4] : memref<1x8x8xf32, #tpu.memory_space<vmem>>, vector<1x8x8xf32>
    %3 = vector.shape_cast %2 : vector<1x8x8xf32> to vector<8x8xf32>
    %4 = vector.shape_cast %3 : vector<8x8xf32> to vector<8x8x1xf32>
    %5 = vector.broadcast %4 : vector<8x8x1xf32> to vector<8x8x2xf32>
    %6 = vector.shape_cast %5 : vector<8x8x2xf32> to vector<8x16xf32>
    %7 = vector.shape_cast %6 : vector<8x16xf32> to vector<8x1x16xf32>
    %8 = vector.broadcast %7 : vector<8x1x16xf32> to vector<8x2x16xf32>
    %9 = vector.shape_cast %8 : vector<8x2x16xf32> to vector<16x16xf32>
    %cst = arith.constant 1.280000e+02 : f32
    %10 = vector.broadcast %cst : f32 to vector<16x16xf32>
    %11 = arith.subf %9, %10 : vector<16x16xf32>
    %c0_5 = arith.constant 0 : index
    %c0_6 = arith.constant 0 : index
    %c0_7 = arith.constant 0 : index
    %12 = vector.load %arg4[%c0_5, %c0_6, %c0_7] : memref<1x8x8xf32, #tpu.memory_space<vmem>>, vector<1x8x8xf32>
    %13 = vector.shape_cast %12 : vector<1x8x8xf32> to vector<8x8xf32>
    %14 = vector.shape_cast %13 : vector<8x8xf32> to vector<8x8x1xf32>
    %15 = vector.broadcast %14 : vector<8x8x1xf32> to vector<8x8x2xf32>
    %16 = vector.shape_cast %15 : vector<8x8x2xf32> to vector<8x16xf32>
    %17 = vector.shape_cast %16 : vector<8x16xf32> to vector<8x1x16xf32>
    %18 = vector.broadcast %17 : vector<8x1x16xf32> to vector<8x2x16xf32>
    %19 = vector.shape_cast %18 : vector<8x2x16xf32> to vector<16x16xf32>
    %cst_8 = arith.constant 1.280000e+02 : f32
    %20 = vector.broadcast %cst_8 : f32 to vector<16x16xf32>
    %21 = arith.subf %19, %20 : vector<16x16xf32>
    %cst_9 = arith.constant 1.402000e+00 : f32
    %22 = vector.broadcast %cst_9 : f32 to vector<16x16xf32>
    %23 = arith.mulf %22, %21 : vector<16x16xf32>
    %24 = arith.addf %1, %23 : vector<16x16xf32>
    %cst_10 = arith.constant 3.441360e-01 : f32
    %25 = vector.broadcast %cst_10 : f32 to vector<16x16xf32>
    %26 = arith.mulf %25, %11 : vector<16x16xf32>
    %27 = arith.subf %1, %26 : vector<16x16xf32>
    %cst_11 = arith.constant 7.141360e-01 : f32
    %28 = vector.broadcast %cst_11 : f32 to vector<16x16xf32>
    %29 = arith.mulf %28, %21 : vector<16x16xf32>
    %30 = arith.subf %27, %29 : vector<16x16xf32>
    %cst_12 = arith.constant 1.772000e+00 : f32
    %31 = vector.broadcast %cst_12 : f32 to vector<16x16xf32>
    %32 = arith.mulf %31, %11 : vector<16x16xf32>
    %33 = arith.addf %1, %32 : vector<16x16xf32>
    %cst_13 = arith.constant 0.000000e+00 : f32
    %cst_14 = arith.constant 2.550000e+02 : f32
    %34 = vector.broadcast %cst_13 : f32 to vector<16x16xf32>
    %35 = arith.maximumf %34, %24 : vector<16x16xf32>
    %36 = vector.broadcast %cst_14 : f32 to vector<16x16xf32>
    %37 = arith.minimumf %36, %35 : vector<16x16xf32>
    %cst_15 = arith.constant 0.00392156886 : f32
    %38 = vector.broadcast %cst_15 : f32 to vector<16x16xf32>
    %39 = arith.mulf %37, %38 : vector<16x16xf32>
    %c0_16 = arith.constant 0 : index
    %c0_17 = arith.constant 0 : index
    %c0_18 = arith.constant 0 : index
    %c0_19 = arith.constant 0 : index
    %40 = vector.load %arg5[%c0_16, %c0_17, %c0_18, %c0_19] : memref<1x3x16x16xf32, #tpu.memory_space<vmem>>, vector<1x1x16x16xf32>
    %41 = vector.shape_cast %40 : vector<1x1x16x16xf32> to vector<16x16xf32>
    %42 = vector.shape_cast %39 : vector<16x16xf32> to vector<1x1x16x16xf32>
    tpu.vector_store %arg5[%c0_16, %c0_17, %c0_18, %c0_19], %42 {strides = array<i32>} : memref<1x3x16x16xf32, #tpu.memory_space<vmem>>, vector<1x1x16x16xf32>,
    %cst_20 = arith.constant 0.000000e+00 : f32
    %cst_21 = arith.constant 2.550000e+02 : f32
    %43 = vector.broadcast %cst_20 : f32 to vector<16x16xf32>
    %44 = arith.maximumf %43, %30 : vector<16x16xf32>
    %45 = vector.broadcast %cst_21 : f32 to vector<16x16xf32>
    %46 = arith.minimumf %45, %44 : vector<16x16xf32>
    %cst_22 = arith.constant 0.00392156886 : f32
    %47 = vector.broadcast %cst_22 : f32 to vector<16x16xf32>
    %48 = arith.mulf %46, %47 : vector<16x16xf32>
    %c0_23 = arith.constant 0 : index
    %c1 = arith.constant 1 : index
    %c0_24 = arith.constant 0 : index
    %c0_25 = arith.constant 0 : index
    %49 = vector.load %arg5[%c0_23, %c1, %c0_24, %c0_25] : memref<1x3x16x16xf32, #tpu.memory_space<vmem>>, vector<1x1x16x16xf32>
    %50 = vector.shape_cast %49 : vector<1x1x16x16xf32> to vector<16x16xf32>
    %51 = vector.shape_cast %48 : vector<16x16xf32> to vector<1x1x16x16xf32>
    tpu.vector_store %arg5[%c0_23, %c1, %c0_24, %c0_25], %51 {strides = array<i32>} : memref<1x3x16x16xf32, #tpu.memory_space<vmem>>, vector<1x1x16x16xf32>,
    %cst_26 = arith.constant 0.000000e+00 : f32
    %cst_27 = arith.constant 2.550000e+02 : f32
    %52 = vector.broadcast %cst_26 : f32 to vector<16x16xf32>
    %53 = arith.maximumf %52, %33 : vector<16x16xf32>
    %54 = vector.broadcast %cst_27 : f32 to vector<16x16xf32>
    %55 = arith.minimumf %54, %53 : vector<16x16xf32>
    %cst_28 = arith.constant 0.00392156886 : f32
    %56 = vector.broadcast %cst_28 : f32 to vector<16x16xf32>
    %57 = arith.mulf %55, %56 : vector<16x16xf32>
    %c0_29 = arith.constant 0 : index
    %c2 = arith.constant 2 : index
    %c0_30 = arith.constant 0 : index
    %c0_31 = arith.constant 0 : index
    %58 = vector.load %arg5[%c0_29, %c2, %c0_30, %c0_31] : memref<1x3x16x16xf32, #tpu.memory_space<vmem>>, vector<1x1x16x16xf32>
    %59 = vector.shape_cast %58 : vector<1x1x16x16xf32> to vector<16x16xf32>
    %60 = vector.shape_cast %57 : vector<16x16xf32> to vector<1x1x16x16xf32>
    tpu.vector_store %arg5[%c0_29, %c2, %c0_30, %c0_31], %60 {strides = array<i32>} : memref<1x3x16x16xf32, #tpu.memory_space<vmem>>, vector<1x1x16x16xf32>,
    return
  }
  func.func @transform_0(%arg0: i32, %arg1: i32) -> (i32, i32, i32) {
    %c0_i32 = arith.constant 0 : i32
    %c0_i32_0 = arith.constant 0 : i32
    return %arg0, %arg1, %c0_i32 : i32, i32, i32
  }
  func.func @transform_1(%arg0: i32, %arg1: i32) -> (i32, i32, i32) {
    %c0_i32 = arith.constant 0 : i32
    %c0_i32_0 = arith.constant 0 : i32
    return %arg0, %arg1, %c0_i32 : i32, i32, i32
  }
  func.func @transform_2(%arg0: i32, %arg1: i32) -> (i32, i32, i32) {
    %c0_i32 = arith.constant 0 : i32
    %c0_i32_0 = arith.constant 0 : i32
    return %arg0, %arg1, %c0_i32 : i32, i32, i32
  }
  func.func @transform_3(%arg0: i32, %arg1: i32) -> (i32, i32, i32, i32) {
    %c0_i32 = arith.constant 0 : i32
    %c0_i32_0 = arith.constant 0 : i32
    %c0_i32_1 = arith.constant 0 : i32
    return %arg0, %c0_i32, %arg1, %c0_i32_0 : i32, i32, i32, i32
  }
}

</mosaic_0001>

<bundles_post_ra>
// kernel: decompress_jpeg.4
= control target key start
LH: loop header
LB: loop body
LE: loop exit
PB: predicated region body
PF: predicated region fallthrough
CT: control target
= control target key end

     0   :  { %v326_v0 = vmov 0.0   ;;  %vm327_vm0 = vmmov 0   ;;  %v328_v18 = vmov 1966171168   ;;  %v102_v20 = vlaneseq  ;;  %s329_s19 = smov 112   ;;  %s330_s22 = smov 96   ;;  %s530_s1 = inlined_call_operand.vmem [shape: f32[128,128], index: 1, kind: input, shape index: {}]   ;;  %s531_s0 = inlined_call_operand.vmem [shape: f32[4,128], index: 0, kind: input, shape index: {}]   ;;  %s532_s2 = inlined_call_operand.vmem [shape: f32[4,8,16], index: 2, kind: output, shape index: {}]  }
   0x1   :  { %281 = vmatprep.subr.mxu0 %v326_v0  ;;  %v27_v1 = vld [vmem:[%s530_s1 + $0x78] sm:$0xff]  ;;  %v26_v2 = vld [vmem:[%s530_s1 + $0x70] sm:$0xff]  ;;  %313 = vmatprep.mubr.msk.f32.mxu0 %vm327_vm0, %v326_v0  ;;  %v25_v3 = vld [vmem:[%s530_s1 + $0x68] sm:$0xff]  ;;  %v100_v19 = vunpack.c.l.s4 %v328_v18  ;;  %vm127_vm1 = vcmask 122880   ;;  %s331_s23 = smov 80   ;;  %s332_s24 = smov 64  }
   0x2   :  { %282 = vmatpush3.msra.mxu0 %v27_v1  ;;  %v24_v4 = vld [vmem:[%s530_s1 + $0x60] sm:$0xff]  ;;  %v23_v5 = vld [vmem:[%s530_s1 + $0x58] sm:$0xff]  ;;  %v22_v6 = vld [vmem:[%s530_s1 + $0x50] sm:$0xff]  ;;  %v103_v22 = vshrl.u32 %v102_v20, 7  ;;  %s333_s25 = smov 48   ;;  %s334_s26 = smov 32  }
   0x3   :  { %283 = vmatprep.subr.mxu0 %v326_v0  ;;  %v21_v7 = vld [vmem:[%s530_s1 + $0x48] sm:$0xff]  ;;  %v20_v8 = vld [vmem:[%s530_s1 + $0x40] sm:$0xff]  ;;  %v19_v9 = vld [vmem:[%s530_s1 + $0x38] sm:$0xff]  ;;  %v101_v21 = vunpack.c.0.s8 %v100_v19  ;;  %s335_s27 = smov 16  }
   0x4   :  { %284 = vmatpush3.msra.mxu0 %v26_v2  ;;  %v18_v10 = vld [vmem:[%s530_s1 + $0x30] sm:$0xff]  ;;  %v17_v11 = vld [vmem:[%s530_s1 + $0x28] sm:$0xff]  ;;  %v16_v12 = vld [vmem:[%s530_s1 + $0x20] sm:$0xff]  ;;  %v134_v28 = vsub.s32 0, %v103_v22 }
   0x5   :  { %285 = vmatprep.subr.mxu0 %v326_v0  ;;  %v15_v13 = vld [vmem:[%s530_s1 + $0x18] sm:$0xff]  ;;  %v14_v14 = vld [vmem:[%s530_s1 + $0x10] sm:$0xff]  ;;  %v13_v15 = vld [vmem:[%s530_s1 + $0x8] sm:$0xff]  ;;  %v104_v23 = vsub.s32 %v101_v21, %v103_v22 }
   0x6   :  { %286 = vmatpush3.msra.mxu0 %v25_v3  ;;  %v12_v16 = vld [vmem:[%s530_s1] sm:$0xff] }
   0x7   :  { %287 = vmatprep.subr.mxu0 %v326_v0  ;;  %v11_v17 = vld [vmem:[%s531_s0] sm:$0xf] }
   0x8   :  { %288 = vmatpush3.msra.mxu0 %v24_v4 }
   0x9   :  { %289 = vmatprep.subr.mxu0 %v326_v0 }
   0xa   :  { %290 = vmatpush3.msra.mxu0 %v23_v5 }
   0xb   :  { %291 = vmatprep.subr.mxu0 %v326_v0 }
   0xc   :  { %292 = vmatpush3.msra.mxu0 %v22_v6 }
   0xd   :  { %293 = vmatprep.subr.mxu0 %v326_v0 }
   0xe   :  { %294 = vmatpush3.msra.mxu0 %v21_v7 }
   0xf   :  { %295 = vmatprep.subr.mxu0 %v326_v0 }
  0x10   :  { %296 = vmatpush3.msra.mxu0 %v20_v8 }
  0x11   :  { %297 = vmatprep.subr.mxu0 %v326_v0 }
  0x12   :  { %298 = vmatpush3.msra.mxu0 %v19_v9 }
  0x13   :  { %299 = vmatprep.subr.mxu0 %v326_v0 }
  0x14   :  { %300 = vmatpush3.msra.mxu0 %v18_v10 }
  0x15   :  { %301 = vmatprep.subr.mxu0 %v326_v0 }
  0x16   :  { %302 = vmatpush3.msra.mxu0 %v17_v11 }
  0x17   :  { %303 = vmatprep.subr.mxu0 %v326_v0 }
  0x18   :  { %304 = vmatpush3.msra.mxu0 %v16_v12 }
  0x19   :  { %305 = vmatprep.subr.mxu0 %v326_v0 }
  0x1a   :  { %306 = vmatpush3.msra.mxu0 %v15_v13 }
  0x1b   :  { %307 = vmatprep.subr.mxu0 %v326_v0 }
  0x1c   :  { %308 = vmatpush3.msra.mxu0 %v14_v14 }
  0x1d   :  { %309 = vmatprep.subr.mxu0 %v326_v0 }
  0x1e   :  { %310 = vmatpush3.msra.mxu0 %v13_v15 }
  0x1f   :  { %311 = vmatprep.subr.mxu0 %v326_v0 }
  0x20   :  { %312 = vmatpush3.msra.mxu0 %v12_v16 }
  0x21   :  { %314 = vmatmul.mubr.f32.vlgmr.msra.gmra.mxu0 %v11_v17 }
  0xe1   :  { %v94_v24 = vpop.f32.mrf.mxu0 }
  0xe2   :  { %v95_v25 = vadd.f32 128.0, %v94_v24 }
  0xe3   :  { %v315_v26 = vpop.f32.mrf.mxu0 }
  0xe4   :  { %v105_v27 = vrot.slane %v95_v25, %v104_v23 }
  0xe6   :  { %v106_v29 = vcombine.high %v105_v27, %v105_v27  ;;  %v113_v30 = vrot.slane %v105_v27, %v104_v23 }
  0xe8   :  { %v120_v31 = vrot.slane %v106_v29, %v104_v23  ;;  %v121_v32 = vcombine.high %v113_v30, %v113_v30  ;;  %128 = vst.msk [vmem:[%s532_s2] sm:$0x1] %vm127_vm1, %v113_v30  ;;  %v135_v33 = vrot.slane %v113_v30, %v134_v28 }
  0xea   :  { %v122_v34 = vcombine.high %v120_v31, %v120_v31  ;;  %129 = vst.msk [vmem:[%s532_s2 + $0x8] sm:$0x1] %vm127_vm1, %v120_v31  ;;  %130 = vst.msk [vmem:[%s532_s2 + $0x10] sm:$0x1] %vm127_vm1, %v121_v32  ;;  %v143_v35 = vrot.slane %v121_v32, %v134_v28  ;;  %148 = vrot.lane.b32.xlu0 %v135_v33, %s329_s19  ;;  %v139_v36 = vrot.slane %v120_v31, %v134_v28 }
  0xec   :  { %131 = vst.msk [vmem:[%s532_s2 + $0x18] sm:$0x1] %vm127_vm1, %v122_v34  ;;  %152 = vrot.lane.b32.xlu1 %v143_v35, %s329_s19  ;;  %v147_v37 = vrot.slane %v122_v34, %v134_v28 }
  0xee   :  { %164 = vrot.lane.b32.xlu0 %v135_v33, %s330_s22 }
  0xf0   :  { %166 = vrot.lane.b32.xlu1 %v139_v36, %s330_s22 }
  0xf2   :  { %180 = vrot.lane.b32.xlu0 %v135_v33, %s331_s23 }
  0xf4   :  { %182 = vrot.lane.b32.xlu1 %v139_v36, %s331_s23 }
  0xf6   :  { %196 = vrot.lane.b32.xlu0 %v135_v33, %s332_s24 }
  0xf8   :  { %198 = vrot.lane.b32.xlu1 %v139_v36, %s332_s24 }
  0xfa   :  { %212 = vrot.lane.b32.xlu0 %v135_v33, %s333_s25 }
  0xfc   :  { %214 = vrot.lane.b32.xlu1 %v139_v36, %s333_s25 }
  0xfe   :  { %228 = vrot.lane.b32.xlu0 %v135_v33, %s334_s26 }
 0x100   :  { %230 = vrot.lane.b32.xlu1 %v139_v36, %s334_s26 }
 0x102   :  { %244 = vrot.lane.b32.xlu0 %v135_v33, %s335_s27 }
 0x104   :  { %246 = vrot.lane.b32.xlu1 %v139_v36, %s335_s27 }
 0x106   :  { %150 = vrot.lane.b32.xlu0 %v139_v36, %s329_s19 }
 0x108   :  { %154 = vrot.lane.b32.xlu1 %v147_v37, %s329_s19 }
 0x10a   :  { %168 = vrot.lane.b32.xlu0 %v143_v35, %s330_s22 }
 0x10c   :  { %170 = vrot.lane.b32.xlu1 %v147_v37, %s330_s22 }
 0x10e   :  { %184 = vrot.lane.b32.xlu0 %v143_v35, %s331_s23 }
 0x110   :  { %186 = vrot.lane.b32.xlu1 %v147_v37, %s331_s23 }
 0x112   :  { %200 = vrot.lane.b32.xlu0 %v143_v35, %s332_s24 }
 0x114   :  { %202 = vrot.lane.b32.xlu1 %v147_v37, %s332_s24 }
 0x116   :  { %216 = vrot.lane.b32.xlu0 %v143_v35, %s333_s25 }
 0x118   :  { %218 = vrot.lane.b32.xlu1 %v147_v37, %s333_s25 }
 0x11a   :  { %232 = vrot.lane.b32.xlu0 %v143_v35, %s334_s26 }
 0x11c   :  { %234 = vrot.lane.b32.xlu1 %v147_v37, %s334_s26 }
 0x11e   :  { %248 = vrot.lane.b32.xlu0 %v143_v35, %s335_s27 }
 0x120   :  { %250 = vrot.lane.b32.xlu1 %v147_v37, %s335_s27 }
 0x15c   :  { %v149_v38 = vpop.permute.xlu0 %148 }
 0x15d   :  { %160 = vst.msk [vmem:[%s532_s2 + $0x1] sm:$0x1] %vm127_vm1, %v149_v38 }
 0x15e   :  { %v153_v39 = vpop.permute.xlu1 %152 }
 0x15f   :  { %162 = vst.msk [vmem:[%s532_s2 + $0x11] sm:$0x1] %vm127_vm1, %v153_v39 }
 0x160   :  { %v165_v40 = vpop.permute.xlu0 %164 }
 0x161   :  { %176 = vst.msk [vmem:[%s532_s2 + $0x2] sm:$0x1] %vm127_vm1, %v165_v40 }
 0x162   :  { %v167_v41 = vpop.permute.xlu1 %166 }
 0x163   :  { %177 = vst.msk [vmem:[%s532_s2 + $0xa] sm:$0x1] %vm127_vm1, %v167_v41 }
 0x164   :  { %v181_v42 = vpop.permute.xlu0 %180 }
 0x165   :  { %192 = vst.msk [vmem:[%s532_s2 + $0x3] sm:$0x1] %vm127_vm1, %v181_v42 }
 0x166   :  { %v183_v43 = vpop.permute.xlu1 %182 }
 0x167   :  { %193 = vst.msk [vmem:[%s532_s2 + $0xb] sm:$0x1] %vm127_vm1, %v183_v43 }
 0x168   :  { %v197_v44 = vpop.permute.xlu0 %196 }
 0x169   :  { %208 = vst.msk [vmem:[%s532_s2 + $0x4] sm:$0x1] %vm127_vm1, %v197_v44 }
 0x16a   :  { %v199_v45 = vpop.permute.xlu1 %198 }
 0x16b   :  { %209 = vst.msk [vmem:[%s532_s2 + $0xc] sm:$0x1] %vm127_vm1, %v199_v45 }
 0x16c   :  { %v213_v46 = vpop.permute.xlu0 %212 }
 0x16d   :  { %224 = vst.msk [vmem:[%s532_s2 + $0x5] sm:$0x1] %vm127_vm1, %v213_v46 }
 0x16e   :  { %v215_v47 = vpop.permute.xlu1 %214 }
 0x16f   :  { %225 = vst.msk [vmem:[%s532_s2 + $0xd] sm:$0x1] %vm127_vm1, %v215_v47 }
 0x170   :  { %v229_v48 = vpop.permute.xlu0 %228 }
 0x171   :  { %240 = vst.msk [vmem:[%s532_s2 + $0x6] sm:$0x1] %vm127_vm1, %v229_v48 }
 0x172   :  { %v231_v49 = vpop.permute.xlu1 %230 }
 0x173   :  { %241 = vst.msk [vmem:[%s532_s2 + $0xe] sm:$0x1] %vm127_vm1, %v231_v49 }
 0x174   :  { %v245_v50 = vpop.permute.xlu0 %244 }
 0x175   :  { %256 = vst.msk [vmem:[%s532_s2 + $0x7] sm:$0x1] %vm127_vm1, %v245_v50 }
 0x176   :  { %v247_v51 = vpop.permute.xlu1 %246 }
 0x177   :  { %257 = vst.msk [vmem:[%s532_s2 + $0xf] sm:$0x1] %vm127_vm1, %v247_v51 }
 0x178   :  { %v151_v52 = vpop.permute.xlu0 %150 }
 0x179   :  { %161 = vst.msk [vmem:[%s532_s2 + $0x9] sm:$0x1] %vm127_vm1, %v151_v52 }
 0x17a   :  { %v155_v53 = vpop.permute.xlu1 %154 }
 0x17b   :  { %163 = vst.msk [vmem:[%s532_s2 + $0x19] sm:$0x1] %vm127_vm1, %v155_v53 }
 0x17c   :  { %v169_v54 = vpop.permute.xlu0 %168 }
 0x17d   :  { %178 = vst.msk [vmem:[%s532_s2 + $0x12] sm:$0x1] %vm127_vm1, %v169_v54 }
 0x17e   :  { %v171_v55 = vpop.permute.xlu1 %170 }
 0x17f   :  { %179 = vst.msk [vmem:[%s532_s2 + $0x1a] sm:$0x1] %vm127_vm1, %v171_v55 }
 0x180   :  { %v185_v56 = vpop.permute.xlu0 %184 }
 0x181   :  { %194 = vst.msk [vmem:[%s532_s2 + $0x13] sm:$0x1] %vm127_vm1, %v185_v56 }
 0x182   :  { %v187_v57 = vpop.permute.xlu1 %186 }
 0x183   :  { %195 = vst.msk [vmem:[%s532_s2 + $0x1b] sm:$0x1] %vm127_vm1, %v187_v57 }
 0x184   :  { %v201_v58 = vpop.permute.xlu0 %200 }
 0x185   :  { %210 = vst.msk [vmem:[%s532_s2 + $0x14] sm:$0x1] %vm127_vm1, %v201_v58 }
 0x186   :  { %v203_v59 = vpop.permute.xlu1 %202 }
 0x187   :  { %211 = vst.msk [vmem:[%s532_s2 + $0x1c] sm:$0x1] %vm127_vm1, %v203_v59 }
 0x188   :  { %v217_v60 = vpop.permute.xlu0 %216 }
 0x189   :  { %226 = vst.msk [vmem:[%s532_s2 + $0x15] sm:$0x1] %vm127_vm1, %v217_v60 }
 0x18a   :  { %v219_v61 = vpop.permute.xlu1 %218 }
 0x18b   :  { %227 = vst.msk [vmem:[%s532_s2 + $0x1d] sm:$0x1] %vm127_vm1, %v219_v61 }
 0x18c   :  { %v233_v62 = vpop.permute.xlu0 %232 }
 0x18d   :  { %242 = vst.msk [vmem:[%s532_s2 + $0x16] sm:$0x1] %vm127_vm1, %v233_v62 }
 0x18e   :  { %v235_v63 = vpop.permute.xlu1 %234 }
 0x18f   :  { %243 = vst.msk [vmem:[%s532_s2 + $0x1e] sm:$0x1] %vm127_vm1, %v235_v63 }
 0x190   :  { %v249_v0 = vpop.permute.xlu0 %248 }
 0x191   :  { %258 = vst.msk [vmem:[%s532_s2 + $0x17] sm:$0x1] %vm127_vm1, %v249_v0 }
 0x192   :  { %v251_v1 = vpop.permute.xlu1 %250 }
 0x193   :  { %259 = vst.msk [vmem:[%s532_s2 + $0x1f] sm:$0x1] %vm127_vm1, %v251_v1 }

// kernel: decompress_jpeg.6
= control target key start
LH: loop header
LB: loop body
LE: loop exit
PB: predicated region body
PF: predicated region fallthrough
CT: control target
= control target key end

     0   :  { %v229_v0 = vmov 0.0   ;;  %vm230_vm0 = vmmov 0   ;;  %vm20_vm1 = vcmask 523264   ;;  %v231_v10 = vmov 1966171168   ;;  %s232_s29 = smov 112   ;;  %s345_s1 = inlined_call_operand.vmem [shape: f32[64,64], index: 1, kind: input, shape index: {}]   ;;  %s346_s0 = inlined_call_operand.vmem [shape: f32[2,64], index: 0, kind: input, shape index: {}]   ;;  %s347_s2 = inlined_call_operand.vmem [shape: f32[2,8,8], index: 2, kind: output, shape index: {}]  }
   0x1   :  { %200 = vmatprep.subr.mxu0 %v229_v0  ;;  %v19_v1 = vld [vmem:[%s345_s1 + $0x38] sm:$0xff]  ;;  %v18_v2 = vld [vmem:[%s345_s1 + $0x30] sm:$0xff]  ;;  %216 = vmatprep.mubr.msk.f32.mxu0 %vm230_vm0, %v229_v0  ;;  %v17_v3 = vld [vmem:[%s345_s1 + $0x28] sm:$0xff]  ;;  %v96_v11 = vunpack.c.l.s4 %v231_v10  ;;  %v98_v12 = vlaneseq  ;;  %vm119_vm2 = vcmask 57344   ;;  %s233_s30 = smov 120   ;;  %s234_s3 = smov 104  }
   0x2   :  { %201 = vmatpush3.msra.mxu0 %v19_v1  ;;  %v16_v4 = vld [vmem:[%s345_s1 + $0x20] sm:$0xff]  ;;  %v15_v5 = vld [vmem:[%s345_s1 + $0x18] sm:$0xff]  ;;  %v14_v6 = vld [vmem:[%s345_s1 + $0x10] sm:$0xff]  ;;  %s235_s4 = smov 96   ;;  %s236_s5 = smov 88  }
   0x3   :  { %202 = vmatprep.subr.mxu0 %v229_v0  ;;  %v13_v7 = vld [vmem:[%s345_s1 + $0x8] sm:$0xff]  ;;  %v12_v8 = vld [vmem:[%s345_s1] sm:$0xff]  ;;  %v97_v13 = vunpack.c.0.s8 %v96_v11  ;;  %v99_v14 = vshrl.u32 %v98_v12, 7  ;;  %s237_s6 = smov 80   ;;  %s238_s7 = smov 72  }
   0x4   :  { %203 = vmatpush3.msra.mxu0 %v18_v2  ;;  %v11_v9 = vld [vmem:[%s346_s0] sm:$0x3] }
   0x5   :  { %204 = vmatprep.subr.mxu0 %v229_v0  ;;  %v100_v15 = vsub.s32 %v97_v13, %v99_v14  ;;  %v124_v20 = vsub.s32 0, %v99_v14 }
   0x6   :  { %205 = vmatpush3.msra.mxu0 %v17_v3 }
   0x7   :  { %206 = vmatprep.subr.mxu0 %v229_v0 }
   0x8   :  { %207 = vmatpush3.msra.mxu0 %v16_v4 }
   0x9   :  { %208 = vmatprep.subr.mxu0 %v229_v0 }
   0xa   :  { %209 = vmatpush3.msra.mxu0 %v15_v5 }
   0xb   :  { %210 = vmatprep.subr.mxu0 %v229_v0 }
   0xc   :  { %211 = vmatpush3.msra.mxu0 %v14_v6 }
   0xd   :  { %212 = vmatprep.subr.mxu0 %v229_v0 }
   0xe   :  { %213 = vmatpush3.msra.mxu0 %v13_v7 }
   0xf   :  { %214 = vmatprep.subr.mxu0 %v229_v0 }
  0x10   :  { %215 = vmatpush3.msra.mxu0 %v12_v8 }
  0x11   :  { %217 = vmatmul.mubr.msk.f32.vlgmr.msra.gmra.mxu0 %vm20_vm1, %v11_v9 }
  0xd1   :  { %v90_v16 = vpop.f32.mrf.mxu0 }
  0xd2   :  { %v91_v17 = vadd.f32 128.0, %v90_v16 }
  0xd3   :  { %v218_v18 = vpop.f32.mrf.mxu0 }
  0xd4   :  { %v101_v19 = vrot.slane %v91_v17, %v100_v15 }
  0xd6   :  { %v102_v21 = vcombine.high %v101_v19, %v101_v19  ;;  %v109_v22 = vrot.slane %v101_v19, %v100_v15 }
  0xd8   :  { %v116_v23 = vrot.slane %v102_v21, %v100_v15  ;;  %120 = vst.msk [vmem:[%s347_s2] sm:$0x1] %vm119_vm2, %v109_v22  ;;  %v125_v24 = vrot.slane %v109_v22, %v124_v20 }
  0xda   :  { %121 = vst.msk [vmem:[%s347_s2 + $0x8] sm:$0x1] %vm119_vm2, %v116_v23  ;;  %138 = vrot.lane.b32.xlu1 %v125_v24, %s232_s29  ;;  %130 = vrot.lane.b32.xlu0 %v125_v24, %s233_s30  ;;  %v129_v25 = vrot.slane %v116_v23, %v124_v20 }
  0xde   :  { %146 = vrot.lane.b32.xlu0 %v125_v24, %s234_s3  ;;  %140 = vrot.lane.b32.xlu1 %v129_v25, %s232_s29 }
  0xe2   :  { %154 = vrot.lane.b32.xlu0 %v125_v24, %s235_s4  ;;  %148 = vrot.lane.b32.xlu1 %v129_v25, %s234_s3 }
  0xe6   :  { %162 = vrot.lane.b32.xlu0 %v125_v24, %s236_s5  ;;  %156 = vrot.lane.b32.xlu1 %v129_v25, %s235_s4 }
  0xea   :  { %170 = vrot.lane.b32.xlu0 %v125_v24, %s237_s6  ;;  %164 = vrot.lane.b32.xlu1 %v129_v25, %s236_s5 }
  0xee   :  { %172 = vrot.lane.b32.xlu1 %v129_v25, %s237_s6  ;;  %132 = vrot.lane.b32.xlu0 %v129_v25, %s233_s30 }
  0xf2   :  { %180 = vrot.lane.b32.xlu1 %v129_v25, %s238_s7  ;;  %178 = vrot.lane.b32.xlu0 %v125_v24, %s238_s7 }
 0x14c   :  { %v139_v26 = vpop.permute.xlu1 %138  ;;  %v131_v27 = vpop.permute.xlu0 %130 }
 0x14d   :  { %144 = vst.msk [vmem:[%s347_s2 + $0x2] sm:$0x1] %vm119_vm2, %v139_v26  ;;  %136 = vst.msk [vmem:[%s347_s2 + $0x1] sm:$0x1] %vm119_vm2, %v131_v27 }
 0x150   :  { %v147_v28 = vpop.permute.xlu0 %146  ;;  %v141_v29 = vpop.permute.xlu1 %140 }
 0x151   :  { %152 = vst.msk [vmem:[%s347_s2 + $0x3] sm:$0x1] %vm119_vm2, %v147_v28  ;;  %145 = vst.msk [vmem:[%s347_s2 + $0xa] sm:$0x1] %vm119_vm2, %v141_v29 }
 0x154   :  { %v155_v30 = vpop.permute.xlu0 %154  ;;  %v149_v31 = vpop.permute.xlu1 %148 }
 0x155   :  { %160 = vst.msk [vmem:[%s347_s2 + $0x4] sm:$0x1] %vm119_vm2, %v155_v30  ;;  %153 = vst.msk [vmem:[%s347_s2 + $0xb] sm:$0x1] %vm119_vm2, %v149_v31 }
 0x158   :  { %v163_v32 = vpop.permute.xlu0 %162  ;;  %v157_v33 = vpop.permute.xlu1 %156 }
 0x159   :  { %168 = vst.msk [vmem:[%s347_s2 + $0x5] sm:$0x1] %vm119_vm2, %v163_v32  ;;  %161 = vst.msk [vmem:[%s347_s2 + $0xc] sm:$0x1] %vm119_vm2, %v157_v33 }
 0x15c   :  { %v171_v34 = vpop.permute.xlu0 %170  ;;  %v165_v35 = vpop.permute.xlu1 %164 }
 0x15d   :  { %176 = vst.msk [vmem:[%s347_s2 + $0x6] sm:$0x1] %vm119_vm2, %v171_v34  ;;  %169 = vst.msk [vmem:[%s347_s2 + $0xd] sm:$0x1] %vm119_vm2, %v165_v35 }
 0x160   :  { %v173_v36 = vpop.permute.xlu1 %172  ;;  %v133_v37 = vpop.permute.xlu0 %132 }
 0x161   :  { %177 = vst.msk [vmem:[%s347_s2 + $0xe] sm:$0x1] %vm119_vm2, %v173_v36  ;;  %137 = vst.msk [vmem:[%s347_s2 + $0x9] sm:$0x1] %vm119_vm2, %v133_v37 }
 0x164   :  { %v181_v38 = vpop.permute.xlu1 %180  ;;  %v179_v39 = vpop.permute.xlu0 %178 }
 0x165   :  { %185 = vst.msk [vmem:[%s347_s2 + $0xf] sm:$0x1] %vm119_vm2, %v181_v38  ;;  %184 = vst.msk [vmem:[%s347_s2 + $0x7] sm:$0x1] %vm119_vm2, %v179_v39 }

// kernel: decompress_jpeg.7
= control target key start
LH: loop header
LB: loop body
LE: loop exit
PB: predicated region body
PF: predicated region fallthrough
CT: control target
= control target key end

     0   :  { %8 = vsyncpa [#allocation3], 0  ;;  %s3594_s0 = inlined_call_operand.vmem [shape: f32[2,16,16], index: 0, kind: input, shape index: {}]   ;;  %s3595_s1 = inlined_call_operand.vmem [shape: f32[2,8,8], index: 1, kind: input, shape index: {}]   ;;  %s3596_s2 = inlined_call_operand.vmem [shape: f32[2,8,8], index: 2, kind: input, shape index: {}]   ;;  %s3597_s3 = inlined_call_operand.hbm [shape: f32[2,3,16,16], index: 3, kind: output, shape index: {}]  }
   0x1   :  { %10 = vsyncpa [#allocation3 + $0x1], 0  ;;  %s2382_s12 = smov 0   ;;  %s2384_s13 = smov 0  }
   0x2   :  { %s2386_s14 = smov 0   ;;  %s2388_s15 = smov 0  }
   0x3   :  { %s2390_s16 = smov 0   ;;  %s2392_s17 = smov 0  }
   0x4 LB: > { %s2171_s18 = sadd.s32 4294967295, %s2348_s17   ;;  %s2172_s19 = sadd.s32 4294967294, %s2348_s17   ;;  %s2348_s17 = sphi %s2392_s17, %s16_s17   ;;  %s2344_s16 = sphi %s2390_s16, %s3717_s16   ;;  %s2340_s15 = sphi %s2388_s15, %s3716_s15   ;;  %s2336_s14 = sphi %s2386_s14, %s3715_s14   ;;  %s2332_s13 = sphi %s2384_s13, %s3714_s13   ;;  %s2328_s12 = sphi %s2382_s12, %s3713_s12  }
   0x5   : > { %s28_s20 = sadd.s32 1, %s2344_s16  ;;  %s121_s21 = sadd.s32 1, %s2336_s14 }
   0x6   : > { %p30_p0 = scmp.ge.s32.totalorder %s28_s20, 2  ;;  %p131_p1 = scmp.ne.s32.totalorder %s2336_s14, %s2332_s13 }
   0x7   : > { %p132_p2 = scmp.eq.s32.totalorder %s2171_s18, 1  ;;  %p137_p3 = scmp.ne.s32.totalorder %s2332_s13, %s2328_s12 }
   0x8   : > { %s3719_s20 = smov (%p30_p0, %s28_s20), 0  ;;  %p138_p5 = scmp.eq.s32.totalorder %s2172_s19, 1 }
   0x9   : > { %p2422_p4 = por %p132_p2, %p131_p1  ;;  %s116_s23 = ssub.s32 %s2344_s16, %s3719_s20 }
   0xa   : > { %p2175_p6 = scmp.ge.s32.totalorder %s2348_s17, 1  ;;  %p119_p7 = scmp.eq.s32.totalorder %s116_s23, 0 }
   0xb   : > { %p2429_p8 = por %p138_p5, %p137_p3  ;;  %p189_p9 = scmp.lt.s32.totalorder %s2348_s17, 3 }
   0xc   : > { %s2435_s25 = scalar_select %p119_p7, %s2336_s14, %s121_s21  }
   0xd   : > { %p190_p10 = pnand %p2175_p6, %p189_p9 }
   0xf   : > { %193 = sbr.rel (%p190_p10) target bundleno = 524 (0x20c), region = 32 }
  0x14   : > { %p232_p11 = scmp.lt.s32.totalorder %s2340_s15, 1  ;;  %v259_v0 = vlaneseq  ;;  %v2350_v28 = vmov 1983009808   ;;  %v2351_v30 = vmov 1934713408   ;;  %v3618_v44 = vmov 0.0  }
  0x15   : > { %v317_v29 = vunpack.c.l.s4 %v2350_v28  ;;  %v332_v31 = vunpack.c.l.s4 %v2351_v30  ;;  %s2353_s7 = smov 2   ;;  %s2354_s8 = smov 4   ;;  %vm931_vm0 = vcmask 15360   ;;  %vm940_vm1 = vcmask 31744  }
  0x16   : > { %s2439_s26 = scalar_select %p232_p11, %s2340_s15, 1  ;;  %v260_v1 = vshrl.u32 %v259_v0, 7  ;;  %vm949_vm2 = vcmask 48128   ;;  %vm958_vm3 = vcmask 64512   ;;  %vm967_vm4 = vcmask 80896  }
  0x17   : > { %v318_v32 = vunpack.c.0.s8 %v317_v29  ;;  %v333_v33 = vunpack.c.0.s8 %v332_v31  ;;  %s2355_s9 = smov 8   ;;  %s2356_s10 = smov 6   ;;  %vm976_vm5 = vcmask 97280   ;;  %vm985_vm6 = vcmask 113664  }
  0x18   : > { %s2178_s27 = sshll.u32 %s2439_s26, 3  ;;  %v2442_v2 = vsub.s32 0, %v260_v1  ;;  %v275_v3 = vsub.s32 2, %v260_v1  ;;  %v268_v4 = vsub.s32 1, %v260_v1  ;;  %v282_v5 = vsub.s32 3, %v260_v1  ;;  %s2357_s11 = smov 10  }
  0x19   : > { %s247_s30 = scalar_lea.vmem %s3595_s1, %s2178_s27  ;;  %v289_v11 = vsub.s32 4, %v260_v1  ;;  %v296_v12 = vsub.s32 5, %v260_v1  ;;  %v303_v15 = vsub.s32 6, %v260_v1  ;;  %v310_v16 = vsub.s32 7, %v260_v1  ;;  %s254_s6 = scalar_lea.vmem %s3596_s2, %s2178_s27 }
  0x1a   : > { %3626 = vst [vmem:[#allocation5_spill] sm:$0xff] %v2442_v2  ;;  %v258_v6 = vld [vmem:[%s247_s30] sm:$0xff]  ;;  %v2452_v34 = vsub.s32 %v318_v32, %v260_v1  ;;  %v2454_v35 = vsub.s32 %v333_v33, %v260_v1  ;;  %s2358_s18 = smov 12   ;;  %s2359_s19 = smov 14   ;;  %vm2025_vm7 = vcmask 130048  }
  0x1b   : > { %v262_v7 = vrot.slane %v258_v6, %v2442_v2  ;;  %v276_v8 = vrot.slane %v258_v6, %v275_v3  ;;  %v269_v9 = vrot.slane %v258_v6, %v268_v4  ;;  %v283_v10 = vrot.slane %v258_v6, %v282_v5  ;;  %v1034_v19 = vld [vmem:[%s254_s6] sm:$0xff]  ;;  %s2203_s21 = sshll.u32 %s2439_s26, 4  ;;  %s228_s28 = sand.u32 1, %s2332_s13  }
  0x1c   : > { %v290_v13 = vrot.slane %v258_v6, %v289_v11  ;;  %v297_v14 = vrot.slane %v258_v6, %v296_v12  ;;  %v304_v17 = vrot.slane %v258_v6, %v303_v15  ;;  %v311_v18 = vrot.slane %v258_v6, %v310_v16  ;;  %3627 = vst [vmem:[#allocation6_spill] sm:$0xff] %v2452_v34  ;;  %s3382_s27 = scalar_lea.vmem %s3594_s0, %s2203_s21  ;;  %s2204_s29 = smul.u32 48, %s228_s28 }
  0x1d   : > { %264 = vbcast.lane.b32.xlu0 %v262_v7, 256  ;;  %278 = vbcast.lane.b32.xlu1 %v276_v8, 256  ;;  %v1045_v20 = vrot.slane %v1034_v19, %v268_v4  ;;  %v1038_v21 = vrot.slane %v1034_v19, %v2442_v2  ;;  %v1059_v22 = vrot.slane %v1034_v19, %v282_v5  ;;  %s2205_s4 = smul.u32 768, %s2340_s15  ;;  %s3548_s15 = scalar_lea.sflag [#allocation3], %s228_s28 }
  0x1e   : > { %v1052_v23 = vrot.slane %v1034_v19, %v275_v3  ;;  %v1073_v24 = vrot.slane %v1034_v19, %v296_v12  ;;  %v1066_v25 = vrot.slane %v1034_v19, %v289_v11  ;;  %v1087_v26 = vrot.slane %v1034_v19, %v310_v16  ;;  %s3420_s30 = scalar_lea.vmem [#allocation2], %s2204_s29 }
  0x1f   : > { %v1080_v27 = vrot.slane %v1034_v19, %v303_v15  ;;  %s2062_s5 = sshll.u32 %s3420_s30, 4  ;;  %s3540_s5 = int_to_ptr.vmem [resolvable:$true] %s2062_s5 }
  0x21   : > { %271 = vbcast.lane.b32.xlu0 %v269_v9, 256  ;;  %285 = vbcast.lane.b32.xlu1 %v283_v10, 256 }
  0x25   : > { %292 = vbcast.lane.b32.xlu0 %v290_v13, 256  ;;  %299 = vbcast.lane.b32.xlu1 %v297_v14, 256 }
  0x29   : > { %306 = vbcast.lane.b32.xlu0 %v304_v17, 256  ;;  %313 = vbcast.lane.b32.xlu1 %v311_v18, 256 }
  0x2d   : > { %1047 = vbcast.lane.b32.xlu0 %v1045_v20, 256  ;;  %1040 = vbcast.lane.b32.xlu1 %v1038_v21, 256 }
  0x31   : > { %1061 = vbcast.lane.b32.xlu0 %v1059_v22, 256  ;;  %1054 = vbcast.lane.b32.xlu1 %v1052_v23, 256 }
  0x35   : > { %1075 = vbcast.lane.b32.xlu0 %v1073_v24, 256  ;;  %1068 = vbcast.lane.b32.xlu1 %v1066_v25, 256 }
  0x39   : > { %1089 = vbcast.lane.b32.xlu0 %v1087_v26, 256  ;;  %1082 = vbcast.lane.b32.xlu1 %v1080_v27, 256 }
  0x8f   : > { %v265_v36 = vpop.permute.xlu0 %264  ;;  %v279_v37 = vpop.permute.xlu1 %278 }
  0x90   : > { %v322_v38 = vrot.slane %v265_v36, %v2452_v34  ;;  %v420_v39 = vrot.slane %v279_v37, %v2452_v34  ;;  %v315_v45 = vcombine.high %v265_v36, %v3618_v44  ;;  %v413_v49 = vcombine.high %v279_v37, %v3618_v44 }
  0x92   : > { %v2459_v40 = vrot.slane %v322_v38, %v2454_v35  ;;  %v2462_v41 = vrot.slane %v420_v39, %v2454_v35  ;;  %v2482_v57 = vrot.slane %v315_v45, %v2452_v34  ;;  %v330_v60 = vcombine.high %v322_v38, %v3618_v44 }
  0x93   : > { %v272_v42 = vpop.permute.xlu0 %271  ;;  %v286_v43 = vpop.permute.xlu1 %285  ;;  %v427_v0 = vrot.slane %v413_v49, %v2452_v34  ;;  %v428_v4 = vcombine.high %v420_v39, %v3618_v44 }
  0x94   : > { %3628 = vst [vmem:[#allocation7_spill] sm:$0xff] %v2459_v40  ;;  %3629 = vst [vmem:[#allocation8_spill] sm:$0xff] %v2462_v41  ;;  %v371_v46 = vrot.slane %v272_v42, %v2452_v34  ;;  %v360_v47 = vcombine.high %v2459_v40, %v3618_v44  ;;  %v469_v48 = vrot.slane %v286_v43, %v2452_v34 }
  0x95   : > { %v458_v51 = vcombine.high %v2462_v41, %v3618_v44  ;;  %v364_v52 = vcombine.high %v272_v42, %v3618_v44  ;;  %v462_v53 = vcombine.high %v286_v43, %v3618_v44  ;;  %v2535_v24 = vrot.slane %v2482_v57, %v2454_v35 }
  0x96   : > { %v2471_v50 = vrot.slane %v371_v46, %v2454_v35  ;;  %715 = vrot.lane.b32.xlu0 %v360_v47, %s2353_s7  ;;  %v2479_v54 = vrot.slane %v469_v48, %v2454_v35  ;;  %v379_v14 = vcombine.high %v371_v46, %v3618_v44  ;;  %v2543_v27 = vrot.slane %v427_v0, %v2454_v35 }
  0x97   : > { %v293_v55 = vpop.permute.xlu0 %292  ;;  %v300_v56 = vpop.permute.xlu1 %299  ;;  %v378_v5 = vrot.slane %v364_v52, %v2452_v34  ;;  %v476_v6 = vrot.slane %v462_v53, %v2452_v34  ;;  %v344_v37 = vrot.slane %v330_v60, %v2454_v35  ;;  %v477_v42 = vcombine.high %v469_v48, %v3618_v44 }
  0x98   : > { %3630 = vst [vmem:[#allocation9_spill] sm:$0xff] %v2471_v50  ;;  %3631 = vst [vmem:[#allocation10_spill] sm:$0xff] %v2479_v54  ;;  %v518_v58 = vrot.slane %v293_v55, %v2452_v34  ;;  %v409_v59 = vcombine.high %v2471_v50, %v3618_v44  ;;  %v511_v61 = vcombine.high %v293_v55, %v3618_v44 }
  0x99   : > { %v560_v62 = vcombine.high %v300_v56, %v3618_v44  ;;  %v2491_v63 = vrot.slane %v300_v56, %v2452_v34  ;;  %v507_v3 = vcombine.high %v2479_v54, %v3618_v44  ;;  %v2540_v26 = vrot.slane %v378_v5, %v2454_v35 }
  0x9a   : > { %v2495_v1 = vrot.slane %v518_v58, %v2454_v35  ;;  %719 = vrot.lane.b32.xlu0 %v458_v51, %s2353_s7  ;;  %717 = vrot.lane.b32.xlu1 %v409_v59, %s2353_s7  ;;  %v525_v15 = vrot.slane %v511_v61, %v2452_v34  ;;  %v2546_v28 = vrot.slane %v476_v6, %v2454_v35 }
  0x9b   : > { %v2506_v7 = vrot.slane %v2491_v63, %v2454_v35  ;;  %v307_v8 = vpop.permute.xlu0 %306  ;;  %v314_v9 = vpop.permute.xlu1 %313  ;;  %v574_v16 = vrot.slane %v560_v62, %v2452_v34  ;;  %v526_v43 = vcombine.high %v518_v58, %v3618_v44  ;;  %v2571_v45 = vrot.slane %v379_v14, %v2454_v35 }
  0x9c   : > { %3632 = vst [vmem:[#allocation11_spill] sm:$0xff] %v2495_v1  ;;  %v609_v10 = vcombine.high %v307_v8, %v3618_v44  ;;  %v2510_v11 = vrot.slane %v307_v8, %v2452_v34  ;;  %v556_v12 = vcombine.high %v2495_v1, %v3618_v44  ;;  %v658_v13 = vcombine.high %v314_v9, %v3618_v44 }
  0x9d   : > { %3633 = vst [vmem:[#allocation12_spill] sm:$0xff] %v2506_v7  ;;  %v665_v17 = vrot.slane %v314_v9, %v2452_v34  ;;  %v605_v20 = vcombine.high %v2506_v7, %v3618_v44  ;;  %v2552_v30 = vrot.slane %v525_v15, %v2454_v35  ;;  %v2555_v31 = vrot.slane %v574_v16, %v2454_v35 }
  0x9e   : > { %v623_v18 = vrot.slane %v609_v10, %v2452_v34  ;;  %v2522_v19 = vrot.slane %v2510_v11, %v2454_v35  ;;  %721 = vrot.lane.b32.xlu1 %v507_v3, %s2353_s7  ;;  %723 = vrot.lane.b32.xlu0 %v556_v12, %s2353_s7  ;;  %v672_v21 = vrot.slane %v658_v13, %v2452_v34 }
  0x9f   : > { %v673_v22 = vcombine.high %v665_v17, %v3618_v44  ;;  %v2531_v23 = vrot.slane %v665_v17, %v2454_v35  ;;  %v1048_v33 = vpop.permute.xlu0 %1047  ;;  %v1041_v39 = vpop.permute.xlu1 %1040  ;;  %v2574_v46 = vrot.slane %v428_v4, %v2454_v35  ;;  %v2582_v49 = vcombine.high %v2535_v24, %v3618_v44 }
  0xa0   : > { %3634 = vst [vmem:[#allocation13_spill] sm:$0xff] %v2522_v19  ;;  %v654_v25 = vcombine.high %v2522_v19, %v3618_v44  ;;  %v2558_v32 = vrot.slane %v623_v18, %v2454_v35  ;;  %v2566_v38 = vrot.slane %v672_v21, %v2454_v35  ;;  %v2586_v51 = vcombine.high %v2540_v26, %v3618_v44 }
  0xa1   : > { %3635 = vst [vmem:[#allocation14_spill] sm:$0xff] %v2531_v23  ;;  %v2549_v29 = vrot.slane %v673_v22, %v2454_v35  ;;  %v703_v36 = vcombine.high %v2531_v23, %v3618_v44  ;;  %v2590_v48 = vcombine.high %v2543_v27, %v3618_v44  ;;  %v2594_v52 = vcombine.high %v2546_v28, %v3618_v44 }
  0xa2   : > { %725 = vrot.lane.b32.xlu1 %v605_v20, %s2353_s7  ;;  %727 = vrot.lane.b32.xlu0 %v654_v25, %s2353_s7  ;;  %v2598_v53 = vcombine.high %v2552_v30, %v3618_v44  ;;  %v2602_v55 = vcombine.high %v2555_v31, %v3618_v44  ;;  %v2606_v56 = vcombine.high %v2558_v32, %v3618_v44 }
  0xa3   : > { %v2578_v47 = vcombine.high %v2549_v29, %v3618_v44  ;;  %v2612_v58 = vcombine.high %v2566_v38, %v3618_v44  ;;  %v345_v59 = vcombine.high %v2482_v57, %v3618_v44  ;;  %v394_v60 = vcombine.high %v378_v5, %v3618_v44  ;;  %v1062_v8 = vpop.permute.xlu0 %1061  ;;  %v1055_v5 = vpop.permute.xlu1 %1054 }
  0xa4   : > { %v443_v61 = vcombine.high %v427_v0, %v3618_v44  ;;  %v492_v62 = vcombine.high %v476_v6, %v3618_v44  ;;  %v541_v3 = vcombine.high %v525_v15, %v3618_v44  ;;  %v590_v4 = vcombine.high %v574_v16, %v3618_v44 }
  0xa5   : > { %v2622_v9 = vrot.slane %v345_v59, %v2454_v35  ;;  %v2625_v10 = vrot.slane %v394_v60, %v2454_v35  ;;  %v639_v12 = vcombine.high %v623_v18, %v3618_v44  ;;  %v688_v57 = vcombine.high %v672_v21, %v3618_v44 }
  0xa6   : > { %729 = vrot.lane.b32.xlu1 %v703_v36, %s2353_s7  ;;  %747 = vrot.lane.b32.xlu0 %v344_v37, %s2354_s8  ;;  %v2630_v0 = vrot.slane %v443_v61, %v2454_v35  ;;  %v2633_v6 = vrot.slane %v492_v62, %v2454_v35  ;;  %v2636_v13 = vrot.slane %v541_v3, %v2454_v35 }
  0xa7   : > { %v2639_v14 = vrot.slane %v590_v4, %v2454_v35  ;;  %v2646_v15 = vrot.slane %v639_v12, %v2454_v35  ;;  %v2649_v16 = vrot.slane %v688_v57, %v2454_v35  ;;  %v2653_v17 = vcombine.high %v2622_v9, %v3618_v44  ;;  %v1076_v60 = vpop.permute.xlu0 %1075 }
  0xa8   : > { %v2657_v18 = vcombine.high %v2625_v10, %v3618_v44  ;;  %v2661_v20 = vcombine.high %v2630_v0, %v3618_v44  ;;  %v575_v21 = vcombine.high %v2491_v63, %v3618_v44  ;;  %v624_v22 = vcombine.high %v2510_v11, %v3618_v44  ;;  %v1069_v11 = vpop.permute.xlu1 %1068 }
  0xa9   : > { %v2668_v25 = vrot.slane %v477_v42, %v2454_v35  ;;  %v2671_v36 = vrot.slane %v526_v43, %v2454_v35  ;;  %v2675_v59 = vcombine.high %v2633_v6, %v3618_v44  ;;  %v1140_v63 = vcombine.high %v1048_v33, %v3618_v44 }
  0xaa   : > { %749 = vrot.lane.b32.xlu1 %v2571_v45, %s2354_s8  ;;  %751 = vrot.lane.b32.xlu0 %v2574_v46, %s2354_s8  ;;  %3636 = vst [vmem:[#allocation15_spill] sm:$0xff] %v2661_v20  ;;  %v2683_v42 = vrot.slane %v1048_v33, %v2452_v34  ;;  %v1091_v43 = vcombine.high %v1041_v39, %v3618_v44 }
  0xab   : > { %3637 = vst [vmem:[#allocation16_spill] sm:$0xff] %v2675_v59  ;;  %v2687_v61 = vrot.slane %v575_v21, %v2454_v35  ;;  %v2690_v62 = vrot.slane %v624_v22, %v2454_v35  ;;  %v2693_v3 = vrot.slane %v1041_v39, %v2452_v34  ;;  %v2697_v4 = vcombine.high %v2636_v13, %v3618_v44  ;;  %v1090_v7 = vpop.permute.xlu0 %1089 }
  0xac   : > { %3638 = vst [vmem:[#allocation17_spill] sm:$0xff] %v2683_v42  ;;  %v2700_v12 = vcombine.high %v344_v37, %v3618_v44  ;;  %v1238_v33 = vcombine.high %v1062_v8, %v3618_v44  ;;  %v2704_v57 = vrot.slane %v1062_v8, %v2452_v34  ;;  %v2708_v21 = vcombine.high %v2639_v14, %v3618_v44  ;;  %v1083_v50 = vpop.permute.xlu1 %1082 }
  0xad   : > { %3639 = vst [vmem:[#allocation18_spill] sm:$0xff] %v2693_v3  ;;  %3640 = vst [vmem:[#allocation19_spill] sm:$0xff] %v2697_v4  ;;  %v2715_v39 = vrot.slane %v1140_v63, %v2452_v34  ;;  %v1189_v37 = vcombine.high %v1055_v5, %v3618_v44  ;;  %v1336_v22 = vcombine.high %v1076_v60, %v3618_v44 }
  0xae   : > { %753 = vrot.lane.b32.xlu1 %v2668_v25, %s2354_s8  ;;  %755 = vrot.lane.b32.xlu0 %v2671_v36, %s2354_s8  ;;  %3641 = vst [vmem:[#allocation20_spill] sm:$0xff] %v2704_v57  ;;  %3642 = vst [vmem:[#allocation21_spill] sm:$0xff] %v2708_v21  ;;  %v1155_v8 = vcombine.high %v2683_v42, %v3618_v44  ;;  %v1105_v2 = vrot.slane %v1091_v43, %v2452_v34 }
  0xaf   : > { %v2723_v23 = vrot.slane %v1055_v5, %v2452_v34  ;;  %v2727_v19 = vcombine.high %v2646_v15, %v3618_v44  ;;  %v1106_v63 = vcombine.high %v2693_v3, %v3618_v44  ;;  %v1287_v1 = vcombine.high %v1069_v11, %v3618_v44 }
  0xb0   : > { %v2733_v54 = vrot.slane %v1069_v11, %v2452_v34  ;;  %v1434_v41 = vcombine.high %v1090_v7, %v3618_v44  ;;  %v1252_v43 = vrot.slane %v1238_v33, %v2452_v34  ;;  %v2738_v5 = vrot.slane %v1076_v60, %v2452_v34 }
  0xb1   : > { %3643 = vst [vmem:[#allocation22_spill] sm:$0xff] %v2723_v23  ;;  %3644 = vst [vmem:[#allocation23_spill] sm:$0xff] %v2727_v19  ;;  %v2741_v40 = vrot.slane %v1090_v7, %v2452_v34  ;;  %v2745_v42 = vcombine.high %v2649_v16, %v3618_v44  ;;  %v1170_v11 = vcombine.high %v2715_v39, %v3618_v44 }
  0xb2   : > { %757 = vrot.lane.b32.xlu1 %v2687_v61, %s2354_s8  ;;  %759 = vrot.lane.b32.xlu0 %v2690_v62, %s2354_s8  ;;  %3645 = vst [vmem:[#allocation24_spill] sm:$0xff] %v2733_v54  ;;  %3646 = vst [vmem:[#allocation25_spill] sm:$0xff] %v2738_v5  ;;  %v1203_v60 = vrot.slane %v1189_v37, %v2452_v34  ;;  %v1350_v33 = vrot.slane %v1336_v22, %v2452_v34 }
  0xb3   : > { %3647 = vst [vmem:[#allocation26_spill] sm:$0xff] %v2741_v40  ;;  %3648 = vst [vmem:[#allocation27_spill] sm:$0xff] %v2745_v42  ;;  %v1204_v7 = vcombine.high %v2723_v23, %v3618_v44  ;;  %v1301_v19 = vrot.slane %v1287_v1, %v2452_v34  ;;  %v1448_v42 = vrot.slane %v1434_v41, %v2452_v34 }
  0xb4   : > { %v1121_v21 = vcombine.high %v1105_v2, %v3618_v44  ;;  %v1302_v3 = vcombine.high %v2733_v54, %v3618_v44  ;;  %v2766_v37 = vrot.slane %v1083_v50, %v2452_v34  ;;  %v1268_v22 = vcombine.high %v1252_v43, %v3618_v44 }
  0xb5   : > { %v1351_v1 = vcombine.high %v2738_v5, %v3618_v44  ;;  %v1449_v41 = vcombine.high %v2741_v40, %v3618_v44  ;;  %v1219_v54 = vcombine.high %v1203_v60, %v3618_v44  ;;  %v1317_v5 = vcombine.high %v1301_v19, %v3618_v44 }
  0xb6   : > { %761 = vrot.lane.b32.xlu1 %v2549_v29, %s2354_s8  ;;  %811 = vrot.lane.b32.xlu0 %v2535_v24, %s2355_s9  ;;  %v1385_v29 = vcombine.high %v1083_v50, %v3618_v44  ;;  %v1253_v24 = vcombine.high %v2704_v57, %v3618_v44  ;;  %3649 = vst [vmem:[#allocation28_spill] sm:$0xff] %v2766_v37 }
  0xb7   : > { %v1366_v50 = vcombine.high %v1350_v33, %v3618_v44  ;;  %v1400_v57 = vcombine.high %v2766_v37, %v3618_v44  ;;  %v1464_v4 = vcombine.high %v1448_v42, %v3618_v44  ;;  %v2785_v40 = vrot.slane %v1106_v63, %v2454_v35 }
  0xb8   : > { %v1399_v23 = vrot.slane %v1385_v29, %v2452_v34  ;;  %v2788_v29 = vrot.slane %v1204_v7, %v2454_v35  ;;  %v2795_v34 = vrot.slane %v1302_v3, %v2454_v35  ;;  %v2798_v37 = vrot.slane %v1253_v24, %v2454_v35 }
  0xb9   : > { %v2801_v59 = vrot.slane %v1400_v57, %v2454_v35  ;;  %v2804_v63 = vrot.slane %v1351_v1, %v2454_v35  ;;  %v2808_v7 = vcombine.high %v2785_v40, %v3618_v44  ;;  %v2811_v20 = vrot.slane %v1449_v41, %v2454_v35 }
  0xba   : > { %813 = vrot.lane.b32.xlu1 %v2540_v26, %s2355_s9  ;;  %815 = vrot.lane.b32.xlu0 %v2543_v27, %s2355_s9  ;;  %v1415_v26 = vcombine.high %v1399_v23, %v3618_v44  ;;  %v2792_v27 = vrot.slane %v1155_v8, %v2454_v35  ;;  %v2819_v3 = vcombine.high %v2788_v29, %v3618_v44 }
  0xbb   : > { %v2827_v8 = vcombine.high %v2795_v34, %v3618_v44  ;;  %v2831_v24 = vcombine.high %v2798_v37, %v3618_v44  ;;  %v2842_v1 = vrot.slane %v1105_v2, %v2454_v35  ;;  %v2846_v41 = vcombine.high %v2811_v20, %v3618_v44 }
  0xbc   : > { %v2823_v57 = vcombine.high %v2792_v27, %v3618_v44  ;;  %v2863_v2 = vrot.slane %v1252_v43, %v2454_v35 }
  0xbd   : > { %3651 = vst [vmem:[#allocation30_spill] sm:$0xff] %v2827_v8  ;;  %3652 = vst [vmem:[#allocation31_spill] sm:$0xff] %v2831_v24  ;;  %v2849_v8 = vrot.slane %v1203_v60, %v2454_v35  ;;  %v2853_v24 = vrot.slane %v2715_v39, %v2454_v35  ;;  %v2869_v60 = vrot.slane %v1350_v33, %v2454_v35 }
  0xbe   : > { %817 = vrot.lane.b32.xlu1 %v2546_v28, %s2355_s9  ;;  %819 = vrot.lane.b32.xlu0 %v2552_v30, %s2355_s9  ;;  %3650 = vst [vmem:[#allocation29_spill] sm:$0xff] %v2823_v57  ;;  %v2835_v28 = vcombine.high %v2801_v59, %v3618_v44  ;;  %v2839_v30 = vcombine.high %v2804_v63, %v3618_v44 }
  0xbf   : > { %v2866_v57 = vrot.slane %v1399_v23, %v2454_v35  ;;  %v2880_v39 = vrot.slane %v1448_v42, %v2454_v35  ;;  %v2884_v23 = vcombine.high %v2849_v8, %v3618_v44  ;;  %v2900_v42 = vcombine.high %v2869_v60, %v3618_v44 }
  0xc0   : > { %3653 = vst [vmem:[#allocation32_spill] sm:$0xff] %v2835_v28  ;;  %3654 = vst [vmem:[#allocation33_spill] sm:$0xff] %v2839_v30  ;;  %v2856_v28 = vrot.slane %v1301_v19, %v2454_v35  ;;  %v2860_v30 = vcombine.high %v2842_v1, %v3618_v44  ;;  %v2877_v19 = vcombine.high %v2853_v24, %v3618_v44 }
  0xc1   : > { %3656 = vst [vmem:[#allocation35_spill] sm:$0xff] %v2884_v23  ;;  %3660 = vst [vmem:[#allocation39_spill] sm:$0xff] %v2900_v42  ;;  %v2904_v33 = vcombine.high %v2880_v39, %v3618_v44  ;;  %v2916_v23 = vrot.slane %v1268_v22, %v2454_v35  ;;  %v2922_v42 = vrot.slane %v1366_v50, %v2454_v35 }
  0xc2   : > { %821 = vrot.lane.b32.xlu1 %v2555_v31, %s2355_s9  ;;  %823 = vrot.lane.b32.xlu0 %v2558_v32, %s2355_s9  ;;  %3655 = vst [vmem:[#allocation34_spill] sm:$0xff] %v2877_v19  ;;  %v2888_v43 = vcombine.high %v2856_v28, %v3618_v44  ;;  %v2892_v31 = vcombine.high %v2863_v2, %v3618_v44 }
  0xc3   : > { %v2896_v32 = vcombine.high %v2866_v57, %v3618_v44  ;;  %v2907_v19 = vrot.slane %v1121_v21, %v2454_v35  ;;  %v2925_v44 = vrot.slane %v1415_v26, %v2454_v35  ;;  %v3661_v21 = vmov 0.0  }
  0xc4   : > { %3657 = vst [vmem:[#allocation36_spill] sm:$0xff] %v2888_v43  ;;  %3658 = vst [vmem:[#allocation37_spill] sm:$0xff] %v2892_v31  ;;  %v2910_v43 = vrot.slane %v1170_v11, %v2454_v35  ;;  %v2913_v31 = vrot.slane %v1219_v54, %v2454_v35  ;;  %v2932_v54 = vrot.slane %v1464_v4, %v2454_v35 }
  0xc5   : > { %3659 = vst [vmem:[#allocation38_spill] sm:$0xff] %v2896_v32  ;;  %v2919_v32 = vrot.slane %v1317_v5, %v2454_v35  ;;  %v2936_v5 = vcombine.high %v2907_v19, %v3661_v21  ;;  %v410_v50 = vcombine.high %v2571_v45, %v3661_v21  ;;  %v459_v26 = vcombine.high %v2574_v46, %v3661_v21 }
  0xc6   : > { %825 = vrot.lane.b32.xlu1 %v2566_v38, %s2355_s9  ;;  %779 = vrot.lane.b32.xlu0 %v2700_v12, %s2356_s10  ;;  %v2940_v11 = vcombine.high %v2910_v43, %v3661_v21  ;;  %v2944_v22 = vcombine.high %v2913_v31, %v3661_v21  ;;  %v2948_v38 = vcombine.high %v2916_v23, %v3661_v21 }
  0xc7   : > { %v2952_v4 = vcombine.high %v2919_v32, %v3661_v21  ;;  %v2956_v12 = vcombine.high %v2922_v42, %v3661_v21  ;;  %v557_v45 = vcombine.high %v2671_v36, %v3661_v21  ;;  %v606_v46 = vcombine.high %v2687_v61, %v3661_v21  ;;  %v3678_v36 = vld [vmem:[#allocation25_spill] sm:$0xff] }
  0xc8   : > { %3662 = vst [vmem:[#allocation40_spill] sm:$0xff] %v2944_v22  ;;  %3663 = vst [vmem:[#allocation41_spill] sm:$0xff] %v2948_v38  ;;  %v2964_v22 = vcombine.high %v2925_v44, %v3661_v21  ;;  %v2968_v38 = vcombine.high %v2932_v54, %v3661_v21  ;;  %v3067_v61 = vrot.slane %v3678_v36, %v2454_v35  ;;  %v3687_v36 = vld [vmem:[#allocation32_spill] sm:$0xff] }
  0xc9   : > { %3664 = vst [vmem:[#allocation42_spill] sm:$0xff] %v2956_v12  ;;  %v508_v12 = vcombine.high %v2668_v25, %v3661_v21 }
  0xca   : > { %3665 = vst [vmem:[#allocation43_spill] sm:$0xff] %v2968_v38  ;;  %781 = vrot.lane.b32.xlu1 %v410_v50, %s2356_s10  ;;  %783 = vrot.lane.b32.xlu0 %v459_v26, %s2356_s10  ;;  %v655_v38 = vcombine.high %v2690_v62, %v3661_v21  ;;  %v3680_v62 = vld [vmem:[#allocation28_spill] sm:$0xff] }
  0xce   : > { %785 = vrot.lane.b32.xlu1 %v508_v12, %s2356_s10  ;;  %787 = vrot.lane.b32.xlu0 %v557_v45, %s2356_s10 }
  0xd2   : > { %789 = vrot.lane.b32.xlu1 %v606_v46, %s2356_s10  ;;  %791 = vrot.lane.b32.xlu0 %v655_v38, %s2356_s10  ;;  %v3071_v38 = vrot.slane %v3680_v62, %v2454_v35  ;;  %v3682_v46 = vld [vmem:[#allocation26_spill] sm:$0xff] }
  0xd6   : > { %793 = vrot.lane.b32.xlu1 %v2578_v47, %s2356_s10  ;;  %843 = vrot.lane.b32.xlu0 %v2582_v49, %s2357_s11  ;;  %v3666_v47 = vld [vmem:[#allocation15_spill] sm:$0xff]  ;;  %v3667_v49 = vld [vmem:[#allocation16_spill] sm:$0xff] }
  0xd7   : > { %3679 = vst [vmem:[#allocation16_spill] sm:$0xff] %v3067_v61 }
  0xda   : > { %845 = vrot.lane.b32.xlu1 %v2586_v51, %s2357_s11  ;;  %847 = vrot.lane.b32.xlu0 %v2590_v48, %s2357_s11  ;;  %v3668_v51 = vld [vmem:[#allocation19_spill] sm:$0xff]  ;;  %v3669_v48 = vld [vmem:[#allocation18_spill] sm:$0xff] }
  0xdb   : > { %3681 = vst [vmem:[#allocation19_spill] sm:$0xff] %v3071_v38 }
  0xde   : > { %849 = vrot.lane.b32.xlu1 %v2594_v52, %s2357_s11  ;;  %851 = vrot.lane.b32.xlu0 %v2598_v53, %s2357_s11  ;;  %v3030_v52 = vrot.slane %v3669_v48, %v2454_v35  ;;  %v3670_v53 = vld [vmem:[#allocation21_spill] sm:$0xff]  ;;  %v1430_v48 = vcombine.high %v3071_v38, %v3661_v21 }
  0xe2   : > { %853 = vrot.lane.b32.xlu1 %v2602_v55, %s2357_s11  ;;  %855 = vrot.lane.b32.xlu0 %v2606_v56, %s2357_s11  ;;  %v3671_v55 = vld [vmem:[#allocation23_spill] sm:$0xff]  ;;  %v3672_v56 = vld [vmem:[#allocation17_spill] sm:$0xff] }
  0xe6   : > { %857 = vrot.lane.b32.xlu1 %v2612_v58, %s2357_s11  ;;  %875 = vrot.lane.b32.xlu0 %v2622_v9, %s2358_s18  ;;  %v3038_v58 = vrot.slane %v3672_v56, %v2454_v35  ;;  %v3673_v9 = vld [vmem:[#allocation22_spill] sm:$0xff] }
  0xe8   : > { %v1185_v25 = vcombine.high %v3038_v58, %v3661_v21 }
  0xea   : > { %877 = vrot.lane.b32.xlu1 %v2625_v10, %s2358_s18  ;;  %879 = vrot.lane.b32.xlu0 %v2630_v0, %s2358_s18  ;;  %v3042_v10 = vrot.slane %v3673_v9, %v2454_v35  ;;  %v1136_v0 = vcombine.high %v3030_v52, %v3661_v21 }
  0xee   : > { %881 = vrot.lane.b32.xlu1 %v2633_v6, %s2358_s18  ;;  %883 = vrot.lane.b32.xlu0 %v2636_v13, %s2358_s18  ;;  %v3674_v6 = vld [vmem:[#allocation27_spill] sm:$0xff]  ;;  %v3675_v13 = vld [vmem:[#allocation20_spill] sm:$0xff] }
  0xf2   : > { %885 = vrot.lane.b32.xlu1 %v2639_v14, %s2358_s18  ;;  %887 = vrot.lane.b32.xlu0 %v2646_v15, %s2358_s18  ;;  %v3051_v14 = vrot.slane %v3675_v13, %v2454_v35  ;;  %v3676_v15 = vld [vmem:[#allocation24_spill] sm:$0xff] }
  0xf4   : > { %v1283_v45 = vcombine.high %v3051_v14, %v3661_v21 }
  0xf6   : > { %889 = vrot.lane.b32.xlu1 %v2649_v16, %s2358_s18  ;;  %907 = vrot.lane.b32.xlu0 %v2653_v17, %s2359_s19  ;;  %v3055_v16 = vrot.slane %v3676_v15, %v2454_v35 }
  0xf8   : > { %3677 = vst [vmem:[#allocation15_spill] sm:$0xff] %v3055_v16  ;;  %v1332_v26 = vcombine.high %v3055_v16, %v3661_v21 }
  0xfa   : > { %909 = vrot.lane.b32.xlu1 %v2657_v18, %s2359_s19  ;;  %911 = vrot.lane.b32.xlu0 %v3666_v47, %s2359_s19  ;;  %v1234_v18 = vcombine.high %v3042_v10, %v3661_v21  ;;  %v3085_v47 = vrot.slane %v3682_v46, %v2454_v35 }
  0xfc   : > { %3683 = vst [vmem:[#allocation18_spill] sm:$0xff] %v3085_v47  ;;  %v1479_v35 = vcombine.high %v3085_v47, %v3661_v21 }
  0xfe   : > { %913 = vrot.lane.b32.xlu1 %v3667_v49, %s2359_s19  ;;  %915 = vrot.lane.b32.xlu0 %v3668_v51, %s2359_s19 }
 0x102   : > { %917 = vrot.lane.b32.xlu1 %v3670_v53, %s2359_s19  ;;  %919 = vrot.lane.b32.xlu0 %v3671_v55, %s2359_s19  ;;  %v1381_v53 = vcombine.high %v3067_v61, %v3661_v21 }
 0x106   : > { %921 = vrot.lane.b32.xlu1 %v3674_v6, %s2359_s19  ;;  %1491 = vrot.lane.b32.xlu0 %v1136_v0, %s2353_s7 }
 0x108   : > { %v3057_v17 = vpop.permute.xlu0 %715 }
 0x10a   : > { %1495 = vrot.lane.b32.xlu0 %v1234_v18, %s2353_s7  ;;  %1493 = vrot.lane.b32.xlu1 %v1185_v25, %s2353_s7  ;;  %v3685_v18 = vld [vmem:[#allocation30_spill] sm:$0xff] }
 0x10c   : > { %v3073_v12 = vpop.permute.xlu1 %717  ;;  %v3075_v50 = vpop.permute.xlu0 %719 }
 0x10e   : > { %1499 = vrot.lane.b32.xlu0 %v1332_v26, %s2353_s7  ;;  %1497 = vrot.lane.b32.xlu1 %v1283_v45, %s2353_s7 }
 0x110   : > { %v3087_v49 = vpop.permute.xlu1 %721  ;;  %v3089_v51 = vpop.permute.xlu0 %723 }
 0x112   : > { %1503 = vrot.lane.b32.xlu0 %v1430_v48, %s2353_s7  ;;  %1501 = vrot.lane.b32.xlu1 %v1381_v53, %s2353_s7 }
 0x114   : > { %v3097_v55 = vpop.permute.xlu1 %725  ;;  %v3099_v56 = vpop.permute.xlu0 %727 }
 0x116   : > { %1523 = vrot.lane.b32.xlu0 %v2785_v40, %s2354_s8  ;;  %1505 = vrot.lane.b32.xlu1 %v1479_v35, %s2353_s7  ;;  %v3689_v35 = vld [vmem:[#allocation35_spill] sm:$0xff] }
 0x118   : > { %v3106_v9 = vpop.permute.xlu1 %729  ;;  %v3108_v0 = vpop.permute.xlu0 %747 }
 0x11a   : > { %1527 = vrot.lane.b32.xlu0 %v2788_v29, %s2354_s8  ;;  %1525 = vrot.lane.b32.xlu1 %v2792_v27, %s2354_s8 }
 0x11c   : > { %v3114_v6 = vpop.permute.xlu1 %749  ;;  %v3116_v13 = vpop.permute.xlu0 %751 }
 0x11e   : > { %1531 = vrot.lane.b32.xlu0 %v2795_v34, %s2354_s8  ;;  %1529 = vrot.lane.b32.xlu1 %v2798_v37, %s2354_s8 }
 0x120   : > { %v3122_v40 = vpop.permute.xlu1 %753  ;;  %v3124_v21 = vpop.permute.xlu0 %755 }
 0x122   : > { %1535 = vrot.lane.b32.xlu0 %v2801_v59, %s2354_s8  ;;  %1533 = vrot.lane.b32.xlu1 %v2804_v63, %s2354_s8  ;;  %v3684_v59 = vld [vmem:[#allocation29_spill] sm:$0xff] }
 0x124   : > { %v3130_v29 = vpop.permute.xlu1 %757  ;;  %v3132_v27 = vpop.permute.xlu0 %759 }
 0x126   : > { %1555 = vrot.lane.b32.xlu0 %v2808_v7, %s2356_s10  ;;  %1537 = vrot.lane.b32.xlu1 %v2811_v20, %s2354_s8  ;;  %v3686_v7 = vld [vmem:[#allocation31_spill] sm:$0xff]  ;;  %s3538_s8 = scalar_lea.hbm %s3597_s3, %s2205_s4 }
 0x128   : > { %v3138_v34 = vpop.permute.xlu1 %761  ;;  %v3140_v37 = vpop.permute.xlu0 %811 }
 0x12a   : > { %1559 = vrot.lane.b32.xlu0 %v2819_v3, %s2356_s10  ;;  %1557 = vrot.lane.b32.xlu1 %v3684_v59, %s2356_s10  ;;  %v3688_v3 = vld [vmem:[#allocation33_spill] sm:$0xff] }
 0x12c   : > { %v3146_v63 = vpop.permute.xlu1 %813  ;;  %v3148_v15 = vpop.permute.xlu0 %815 }
 0x12e   : > { %1563 = vrot.lane.b32.xlu0 %v3685_v18, %s2356_s10  ;;  %1561 = vrot.lane.b32.xlu1 %v3686_v7, %s2356_s10  ;;  %v3691_v18 = vld [vmem:[#allocation36_spill] sm:$0xff] }
 0x130   : > { %v3154_v20 = vpop.permute.xlu1 %817  ;;  %v3156_v25 = vpop.permute.xlu0 %819 }
 0x132   : > { %1567 = vrot.lane.b32.xlu0 %v3687_v36, %s2356_s10  ;;  %1565 = vrot.lane.b32.xlu1 %v3688_v3, %s2356_s10  ;;  %v3693_v36 = vld [vmem:[#allocation38_spill] sm:$0xff]  ;;  %v3694_v3 = vld [vmem:[#allocation39_spill] sm:$0xff] }
 0x134   : > { %v3162_v62 = vpop.permute.xlu1 %821  ;;  %v3164_v26 = vpop.permute.xlu0 %823 }
 0x136   : > { %1587 = vrot.lane.b32.xlu0 %v2842_v1, %s2355_s9  ;;  %1569 = vrot.lane.b32.xlu1 %v2846_v41, %s2356_s10  ;;  %s2272_s10 = scalar_lea.vmem %s3540_s5, 768 }
 0x137   : > { %p2273_p12 = scmp.ne.s32.totalorder %s3540_s5, %s2272_s10 }
 0x138   : > { %v3170_v45 = vpop.permute.xlu1 %825  ;;  %v780_v46 = vpop.permute.xlu0 %779 }
 0x139   : > { %p2274_p13 = pnand %p2273_p12, %p2422_p4 }
 0x13a   : > { %1591 = vrot.lane.b32.xlu0 %v2849_v8, %s2355_s9  ;;  %1589 = vrot.lane.b32.xlu1 %v2853_v24, %s2355_s9 }
 0x13b   : > { %p2275_p0 = pneg %p2274_p13 }
 0x13c   : > { %v782_v48 = vpop.permute.xlu1 %781  ;;  %v3176_v53 = vpop.permute.xlu0 %783 }
 0x13e   : > { %1595 = vrot.lane.b32.xlu0 %v2856_v28, %s2355_s9  ;;  %1593 = vrot.lane.b32.xlu1 %v2863_v2, %s2355_s9 }
 0x140   : > { %v3182_v1 = vpop.permute.xlu1 %785  ;;  %v3184_v41 = vpop.permute.xlu0 %787 }
 0x142   : > { %1599 = vrot.lane.b32.xlu0 %v2866_v57, %s2355_s9  ;;  %1597 = vrot.lane.b32.xlu1 %v2869_v60, %s2355_s9  ;;  %v3690_v57 = vld [vmem:[#allocation34_spill] sm:$0xff] }
 0x144   : > { %v3190_v8 = vpop.permute.xlu1 %789  ;;  %v3192_v24 = vpop.permute.xlu0 %791 }
 0x146   : > { %1619 = vrot.lane.b32.xlu0 %v2860_v30, %s2357_s11  ;;  %1601 = vrot.lane.b32.xlu1 %v2880_v39, %s2355_s9  ;;  %v3692_v30 = vld [vmem:[#allocation37_spill] sm:$0xff] }
 0x148   : > { %v3198_v28 = vpop.permute.xlu1 %793  ;;  %v844_v2 = vpop.permute.xlu0 %843 }
 0x14a   : > { %1623 = vrot.lane.b32.xlu0 %v3689_v35, %s2357_s11  ;;  %1621 = vrot.lane.b32.xlu1 %v3690_v57, %s2357_s11 }
 0x14c   : > { %v3204_v60 = vpop.permute.xlu1 %845  ;;  %v3206_v59 = vpop.permute.xlu0 %847 }
 0x14e   : > { %1627 = vrot.lane.b32.xlu0 %v3691_v18, %s2357_s11  ;;  %1625 = vrot.lane.b32.xlu1 %v3692_v30, %s2357_s11 }
 0x150   : > { %v3212_v39 = vpop.permute.xlu1 %849  ;;  %v3214_v7 = vpop.permute.xlu0 %851 }
 0x152   : > { %1631 = vrot.lane.b32.xlu0 %v3693_v36, %s2357_s11  ;;  %1629 = vrot.lane.b32.xlu1 %v3694_v3, %s2357_s11 }
 0x154   : > { %v3220_v35 = vpop.permute.xlu1 %853  ;;  %v3222_v57 = vpop.permute.xlu0 %855 }
 0x156   : > { %1633 = vrot.lane.b32.xlu1 %v2904_v33, %s2357_s11  ;;  %1651 = vrot.lane.b32.xlu0 %v2907_v19, %s2358_s18  ;;  %s2360_s11 = smov [#allocation2]  }
 0x158   : > { %v3228_v18 = vpop.permute.xlu1 %857  ;;  %v876_v30 = vpop.permute.xlu0 %875 }
 0x15a   : > { %1653 = vrot.lane.b32.xlu1 %v2910_v43, %s2358_s18  ;;  %1655 = vrot.lane.b32.xlu0 %v2913_v31, %s2358_s18  ;;  %v3695_v43 = vld [vmem:[#allocation7_spill] sm:$0xff] }
 0x15b   : > { %v932_v47 = vsel %vm931_vm0, %v3695_v43, %v3057_v17 }
 0x15c   : > { %v878_v36 = vpop.permute.xlu1 %877  ;;  %v880_v3 = vpop.permute.xlu0 %879  ;;  %v941_v31 = vsel %vm940_vm1, %v932_v47, %v3108_v0  ;;  %v3697_v47 = vld [vmem:[#allocation8_spill] sm:$0xff]  ;;  %v3698_v0 = vld [vmem:[#allocation10_spill] sm:$0xff] }
 0x15e   : > { %1657 = vrot.lane.b32.xlu1 %v2916_v23, %s2358_s18  ;;  %1659 = vrot.lane.b32.xlu0 %v2919_v32, %s2358_s18  ;;  %v950_v23 = vsel %vm949_vm2, %v941_v31, %v780_v46  ;;  %v3696_v32 = vld [vmem:[#allocation9_spill] sm:$0xff]  ;;  %v3699_v46 = vld [vmem:[#allocation11_spill] sm:$0xff] }
 0x15f   : > { %v933_v38 = vsel %vm931_vm0, %v3696_v32, %v3073_v12  ;;  %v936_v43 = vsel %vm931_vm0, %v3699_v46, %v3089_v51  ;;  %v959_v16 = vsel %vm958_vm3, %v950_v23, %v3140_v37  ;;  %v3702_v37 = vld [vmem:[#allocation14_spill] sm:$0xff] }
 0x160   : > { %v3238_v19 = vpop.permute.xlu1 %881  ;;  %v3240_v33 = vpop.permute.xlu0 %883  ;;  %v942_v12 = vsel %vm940_vm1, %v933_v38, %v3114_v6  ;;  %v3701_v38 = vld [vmem:[#allocation13_spill] sm:$0xff] }
 0x161   : > { %v951_v32 = vsel %vm949_vm2, %v942_v12, %v782_v48  ;;  %v938_v51 = vsel %vm931_vm0, %v3701_v38, %v3099_v56  ;;  %v945_v48 = vsel %vm940_vm1, %v936_v43, %v3124_v21 }
 0x162   : > { %1661 = vrot.lane.b32.xlu1 %v2922_v42, %s2358_s18  ;;  %1663 = vrot.lane.b32.xlu0 %v2925_v44, %s2358_s18  ;;  %v934_v42 = vsel %vm931_vm0, %v3697_v47, %v3075_v50  ;;  %v935_v44 = vsel %vm931_vm0, %v3698_v0, %v3087_v49  ;;  %v3700_v50 = vld [vmem:[#allocation12_spill] sm:$0xff] }
 0x163   : > { %v943_v31 = vsel %vm940_vm1, %v934_v42, %v3116_v13  ;;  %v937_v49 = vsel %vm931_vm0, %v3700_v50, %v3097_v55  ;;  %v968_v13 = vsel %vm967_vm4, %v959_v16, %v844_v2  ;;  %v947_v16 = vsel %vm940_vm1, %v938_v51, %v3132_v27 }
 0x164   : > { %v3255_v61 = vpop.permute.xlu1 %885  ;;  %v3257_v17 = vpop.permute.xlu0 %887  ;;  %v952_v6 = vsel %vm949_vm2, %v943_v31, %v3176_v53  ;;  %v977_v55 = vsel %vm976_vm5, %v968_v13, %v876_v30  ;;  %v946_v53 = vsel %vm940_vm1, %v937_v49, %v3130_v29  ;;  %v3703_v30 = vld [vmem:[#allocation5_spill] sm:$0xff]  ;;  %v3704_v29 = vld [vmem:[#allocation40_spill] sm:$0xff] }
 0x165   : > { %v961_v21 = vsel %vm958_vm3, %v952_v6, %v3148_v15  ;;  %v955_v42 = vsel %vm949_vm2, %v946_v53, %v3190_v8 }
 0x166   : > { %1665 = vrot.lane.b32.xlu1 %v2932_v54, %s2358_s18  ;;  %1683 = vrot.lane.b32.xlu0 %v2936_v5, %s2359_s19  ;;  %v939_v54 = vsel %vm931_vm0, %v3702_v37, %v3106_v9  ;;  %v944_v5 = vsel %vm940_vm1, %v935_v44, %v3122_v40  ;;  %v960_v9 = vsel %vm958_vm3, %v951_v32, %v3146_v63  ;;  %s2276_s18 = sshll.u32 %s2360_s11, 4  ;;  %s2277_s18 = int_to_ptr.vmem [resolvable:$false] %s2276_s18 }
 0x167   : > { %v953_v40 = vsel %vm949_vm2, %v944_v5, %v3182_v1  ;;  %v948_v27 = vsel %vm940_vm1, %v939_v54, %v3138_v34  ;;  %v954_v63 = vsel %vm949_vm2, %v945_v48, %v3184_v41  ;;  %v969_v1 = vsel %vm967_vm4, %v960_v9, %v3204_v60  ;;  %p2279_p1 = scmp.lt.s32.totalorder %s3540_s5, %s2277_s18 }
 0x168   : > { %v3296_v23 = vpop.permute.xlu1 %889  ;;  %v908_v56 = vpop.permute.xlu0 %907  ;;  %v970_v15 = vsel %vm967_vm4, %v961_v21, %v3206_v59  ;;  %v978_v0 = vsel %vm976_vm5, %v969_v1, %v878_v36  ;;  %v962_v41 = vsel %vm958_vm3, %v953_v40, %v3154_v20  ;;  %v963_v8 = vsel %vm958_vm3, %v954_v63, %v3156_v25  ;;  %v3705_v36 = vld [vmem:[#allocation41_spill] sm:$0xff] }
 0x169   : > { %v986_v2 = vsel %vm985_vm6, %v977_v55, %v908_v56  ;;  %v979_v44 = vsel %vm976_vm5, %v970_v15, %v880_v3  ;;  %v971_v20 = vsel %vm967_vm4, %v962_v41, %v3212_v39  ;;  %v972_v3 = vsel %vm967_vm4, %v963_v8, %v3214_v7  ;;  %v3708_v15 = vld [vmem:[#allocation6_spill] sm:$0xff] }
 0x16a   : > { %v997_v47 = vrot.slane %v986_v2, %v3703_v30  ;;  %1685 = vrot.lane.b32.xlu1 %v2940_v11, %s2359_s19  ;;  %1687 = vrot.lane.b32.xlu0 %v3704_v29, %s2359_s19  ;;  %v956_v11 = vsel %vm949_vm2, %v947_v16, %v3192_v24  ;;  %v964_v31 = vsel %vm958_vm3, %v955_v42, %v3162_v62 }
 0x16b   : > { %v965_v25 = vsel %vm958_vm3, %v956_v11, %v3164_v26  ;;  %v973_v32 = vsel %vm967_vm4, %v964_v31, %v3220_v35  ;;  %v980_v50 = vsel %vm976_vm5, %v971_v20, %v3238_v19  ;;  %v3706_v19 = vld [vmem:[#allocation42_spill] sm:$0xff] }
 0x16c   : > { %v910_v34 = vpop.permute.xlu1 %909  ;;  %v912_v46 = vpop.permute.xlu0 %911  ;;  %v2180_v43 = vadd.f32 -128.0, %v997_v47  ;;  %v974_v54 = vsel %vm967_vm4, %v965_v25, %v3222_v57  ;;  %v982_v5 = vsel %vm976_vm5, %v973_v32, %v3255_v61 }
 0x16d   : > { %v987_v60 = vsel %vm985_vm6, %v978_v0, %v910_v34  ;;  %v988_v59 = vsel %vm985_vm6, %v979_v44, %v912_v46  ;;  %v983_v55 = vsel %vm976_vm5, %v974_v54, %v3257_v17  ;;  %v3707_v17 = vld [vmem:[#allocation43_spill] sm:$0xff] }
 0x16e   : > { %v1001_v12 = vrot.slane %v987_v60, %v3703_v30  ;;  %v1005_v24 = vrot.slane %v988_v59, %v3703_v30  ;;  %1689 = vrot.lane.b32.xlu1 %v3705_v36, %s2359_s19  ;;  %1691 = vrot.lane.b32.xlu0 %v2952_v4, %s2359_s19  ;;  %v981_v4 = vsel %vm976_vm5, %v972_v3, %v3240_v33  ;;  %v1857_v51 = vmul.f32 0.344136, %v2180_v43  ;;  %v3394_v60 = vld [vmem:[%s3382_s27] sm:$0xff] }
 0x16f   : > { %v1965_v26 = vmul.f32 1.772, %v2180_v43  ;;  %v957_v33 = vsel %vm949_vm2, %v948_v27, %v3198_v28 }
 0x170   : > { %v2181_v49 = vadd.f32 -128.0, %v1001_v12  ;;  %v914_v39 = vpop.permute.xlu1 %913  ;;  %v916_v38 = vpop.permute.xlu0 %915  ;;  %v2182_v7 = vadd.f32 -128.0, %v1005_v24  ;;  %v966_v61 = vsel %vm958_vm3, %v957_v33, %v3170_v45 }
 0x171   : > { %v989_v62 = vsel %vm985_vm6, %v980_v50, %v914_v39  ;;  %v990_v6 = vsel %vm985_vm6, %v981_v4, %v916_v38  ;;  %v975_v27 = vsel %vm967_vm4, %v966_v61, %v3228_v18 }
 0x172   : > { %v1858_v13 = vmul.f32 0.344136, %v2181_v49  ;;  %v1966_v37 = vmul.f32 1.772, %v2181_v49  ;;  %v1009_v35 = vrot.slane %v989_v62, %v3703_v30  ;;  %1693 = vrot.lane.b32.xlu1 %v3706_v19, %s2359_s19  ;;  %1695 = vrot.lane.b32.xlu0 %v2964_v22, %s2359_s19  ;;  %v1013_v48 = vrot.slane %v990_v6, %v3703_v30 }
 0x173   : > { %v1859_v2 = vmul.f32 0.344136, %v2182_v7  ;;  %v1967_v40 = vmul.f32 1.772, %v2182_v7  ;;  %v984_v45 = vsel %vm976_vm5, %v975_v27, %v3296_v23 }
 0x174   : > { %v1873_v56 = vcombine.low %v1857_v51, %v1858_v13  ;;  %v1981_v53 = vcombine.low %v1965_v26, %v1966_v37  ;;  %v2183_v16 = vadd.f32 -128.0, %v1009_v35  ;;  %v918_v9 = vpop.permute.xlu1 %917  ;;  %v920_v22 = vpop.permute.xlu0 %919  ;;  %v2184_v29 = vadd.f32 -128.0, %v1013_v48 }
 0x175   : > { %v991_v28 = vsel %vm985_vm6, %v982_v5, %v918_v9  ;;  %v992_v57 = vsel %vm985_vm6, %v983_v55, %v920_v22  ;;  %v3416_v55 = vld [vmem:[%s3382_s27 + $0x8] sm:$0xff] }
 0x176   : > { %v1860_v21 = vmul.f32 0.344136, %v2183_v16  ;;  %v1968_v47 = vmul.f32 1.772, %v2183_v16  ;;  %1697 = vrot.lane.b32.xlu1 %v3707_v17, %s2359_s19  ;;  %v1017_v63 = vrot.slane %v991_v28, %v3703_v30  ;;  %v1021_v1 = vrot.slane %v992_v57, %v3703_v30  ;;  %s2278_s19 = scalar_lea.vmem %s2277_s18, 1536 }
 0x177   : > { %v3389_v42 = vrot.slane %v1873_v56, %v3708_v15  ;;  %v1989_v34 = vrot.slane %v1981_v53, %v3708_v15  ;;  %v1861_v8 = vmul.f32 0.344136, %v2184_v29  ;;  %v1969_v24 = vmul.f32 1.772, %v2184_v29  ;;  %p2280_p2 = scmp.lt.s32.totalorder %s2278_s19, %s2272_s10 }
 0x178   : > { %v1874_v11 = vcombine.low %v1859_v2, %v1860_v21  ;;  %v1982_v0 = vcombine.low %v1967_v40, %v1968_v47  ;;  %v922_v18 = vpop.permute.xlu1 %921  ;;  %v1492_v44 = vpop.permute.xlu0 %1491  ;;  %v2185_v46 = vadd.f32 -128.0, %v1017_v63  ;;  %v2186_v41 = vadd.f32 -128.0, %v1021_v1 }
 0x179   : > { %v993_v43 = vsel %vm985_vm6, %v984_v45, %v922_v18  ;;  %v1707_v28 = vsel %vm931_vm0, %v3030_v52, %v1492_v44  ;;  %p2281_p3 = por %p2280_p2, %p2279_p1 }
 0x17a   : > { %v3397_v59 = vrot.slane %v1874_v11, %v3708_v15  ;;  %v1996_v23 = vrot.slane %v1982_v0, %v3708_v15  ;;  %v1025_v12 = vrot.slane %v993_v43, %v3703_v30  ;;  %v1862_v36 = vmul.f32 0.344136, %v2185_v46  ;;  %v3709_v0 = vld [vmem:[#allocation15_spill] sm:$0xff] }
 0x17b   : > { %v1970_v20 = vmul.f32 1.772, %v2185_v46  ;;  %v1863_v39 = vmul.f32 0.344136, %v2186_v41  ;;  %v1971_v51 = vmul.f32 1.772, %v2186_v41  ;;  %p2282_p5 = pnand %p2281_p3, %p2275_p0 }
 0x17c   : > { %v1889_v3 = vcombine.low %v3389_v42, %v3397_v59  ;;  %v1997_v31 = vcombine.low %v1989_v34, %v1996_v23  ;;  %v2187_v25 = vadd.f32 -128.0, %v1025_v12  ;;  %v1494_v32 = vpop.permute.xlu1 %1493  ;;  %v1496_v50 = vpop.permute.xlu0 %1495  ;;  %v1890_v4 = vcombine.low %v1861_v8, %v1862_v36  ;;  %v3710_v46 = vld [vmem:[#allocation16_spill] sm:$0xff]  ;;  %v3711_v43 = vld [vmem:[#allocation19_spill] sm:$0xff]  ;;  %v3712_v36 = vld [vmem:[#allocation18_spill] sm:$0xff] }
 0x17d   : > { %v1998_v49 = vcombine.low %v1969_v24, %v1970_v20  ;;  %v1708_v17 = vsel %vm931_vm0, %v3038_v58, %v1494_v32  ;;  %v1709_v27 = vsel %vm931_vm0, %v3042_v10, %v1496_v50 }
 0x17e   : > { %v2017_v38 = vadd.f32 %v1997_v31, %v3394_v60  ;;  %v1864_v7 = vmul.f32 0.344136, %v2187_v25  ;;  %v1972_v62 = vmul.f32 1.772, %v2187_v25  ;;  %v3408_v19 = vrot.slane %v1890_v4, %v3708_v15 }
 0x17f   : > { %v2006_v54 = vrot.slane %v1998_v49, %v3708_v15 }
 0x180   : > { %v2037_v6 = vmax.f32 %v2017_v38, 0.0  ;;  %v1891_v26 = vcombine.low %v1863_v39, %v1864_v7  ;;  %v1999_v13 = vcombine.low %v1971_v51, %v1972_v62  ;;  %v1498_v37 = vpop.permute.xlu1 %1497  ;;  %v1500_v35 = vpop.permute.xlu0 %1499 }
 0x181   : > { %v1710_v52 = vsel %vm931_vm0, %v3051_v14, %v1498_v37  ;;  %v1711_v18 = vsel %vm931_vm0, %v3709_v0, %v1500_v35 }
 0x182   : > { %v2039_v33 = vmin.f32 %v2037_v6, 255.0  ;;  %v3412_v5 = vrot.slane %v1891_v26, %v3708_v15  ;;  %v2013_v48 = vrot.slane %v1999_v13, %v3708_v15 }
 0x184   : > { %v2041_v56 = vmul.f32 0.003921569, %v2039_v33  ;;  %v1906_v53 = vcombine.low %v3408_v19, %v3412_v5  ;;  %v2014_v16 = vcombine.low %v2006_v54, %v2013_v48  ;;  %v1502_v9 = vpop.permute.xlu1 %1501  ;;  %v1504_v22 = vpop.permute.xlu0 %1503 }
 0x185   : > { %v1712_v41 = vsel %vm931_vm0, %v3710_v46, %v1502_v9  ;;  %v1713_v23 = vsel %vm931_vm0, %v3711_v43, %v1504_v22 }
 0x186   : > { %2198 = vst.msk [vmem:[%s3420_s30 + $0x20] sm:$0xff] %vm2025_vm7, %v2041_v56  ;;  %v2018_v2 = vadd.f32 %v2014_v16, %v3416_v55 }
 0x188   : > { %v2038_v40 = vmax.f32 %v2018_v2, 0.0  ;;  %v1506_v57 = vpop.permute.xlu1 %1505  ;;  %v1524_v61 = vpop.permute.xlu0 %1523 }
 0x189   : > { %v1715_v21 = vsel %vm940_vm1, %v1707_v28, %v1524_v61  ;;  %v1714_v20 = vsel %vm931_vm0, %v3712_v36, %v1506_v57 }
 0x18a   : > { %v2040_v47 = vmin.f32 %v2038_v40, 255.0 }
 0x18c   : > { %v2042_v29 = vmul.f32 0.003921569, %v2040_v47  ;;  %v1526_v63 = vpop.permute.xlu1 %1525  ;;  %v1528_v1 = vpop.permute.xlu0 %1527 }
 0x18d   : > { %v1716_v45 = vsel %vm940_vm1, %v1708_v17, %v1526_v63  ;;  %v1717_v11 = vsel %vm940_vm1, %v1709_v27, %v1528_v1 }
 0x18e   : > { %2199 = vst.msk [vmem:[%s3420_s30 + $0x28] sm:$0xff] %vm2025_vm7, %v2042_v29 }
 0x190   : > { %v1530_v44 = vpop.permute.xlu1 %1529  ;;  %v1532_v34 = vpop.permute.xlu0 %1531 }
 0x191   : > { %v1718_v58 = vsel %vm940_vm1, %v1710_v52, %v1530_v44  ;;  %v1719_v10 = vsel %vm940_vm1, %v1711_v18, %v1532_v34 }
 0x194   : > { %v1534_v8 = vpop.permute.xlu1 %1533  ;;  %v1536_v12 = vpop.permute.xlu0 %1535 }
 0x195   : > { %v1720_v24 = vsel %vm940_vm1, %v1712_v41, %v1534_v8  ;;  %v1721_v14 = vsel %vm940_vm1, %v1713_v23, %v1536_v12 }
 0x198   : > { %v1538_v31 = vpop.permute.xlu1 %1537  ;;  %v1556_v25 = vpop.permute.xlu0 %1555 }
 0x199   : > { %v3451_v32 = vsel %vm940_vm1, %v1714_v20, %v1538_v31  ;;  %v1723_v50 = vsel %vm949_vm2, %v1715_v21, %v1556_v25 }
 0x19c   : > { %v1558_v4 = vpop.permute.xlu1 %1557  ;;  %v1560_v49 = vpop.permute.xlu0 %1559 }
 0x19d   : > { %v1724_v39 = vsel %vm949_vm2, %v1716_v45, %v1558_v4  ;;  %v1725_v46 = vsel %vm949_vm2, %v1717_v11, %v1560_v49 }
 0x1a0   : > { %v1562_v38 = vpop.permute.xlu1 %1561  ;;  %v1564_v51 = vpop.permute.xlu0 %1563 }
 0x1a1   : > { %v1727_v7 = vsel %vm949_vm2, %v1719_v10, %v1564_v51  ;;  %v1726_v36 = vsel %vm949_vm2, %v1718_v58, %v1562_v38 }
 0x1a4   : > { %v1566_v62 = vpop.permute.xlu1 %1565  ;;  %v1568_v6 = vpop.permute.xlu0 %1567 }
 0x1a5   : > { %v1728_v26 = vsel %vm949_vm2, %v1720_v24, %v1566_v62 }
 0x1a8   : > { %v3457_v13 = vpop.permute.xlu1 %1569  ;;  %v1588_v37 = vpop.permute.xlu0 %1587 }
 0x1a9   : > { %v1731_v0 = vsel %vm958_vm3, %v1723_v50, %v1588_v37  ;;  %v1729_v50 = vsel %vm949_vm2, %v1721_v14, %v1568_v6 }
 0x1ac   : > { %v1590_v35 = vpop.permute.xlu1 %1589  ;;  %v1592_v33 = vpop.permute.xlu0 %1591 }
 0x1ad   : > { %v1732_v43 = vsel %vm958_vm3, %v1724_v39, %v1590_v35  ;;  %v1733_v23 = vsel %vm958_vm3, %v1725_v46, %v1592_v33 }
 0x1b0   : > { %v1594_v54 = vpop.permute.xlu1 %1593  ;;  %v1596_v48 = vpop.permute.xlu0 %1595 }
 0x1b1   : > { %v1734_v51 = vsel %vm958_vm3, %v1726_v36, %v1594_v54  ;;  %v1735_v62 = vsel %vm958_vm3, %v1727_v7, %v1596_v48 }
 0x1b4   : > { %v1598_v56 = vpop.permute.xlu1 %1597  ;;  %v1600_v16 = vpop.permute.xlu0 %1599 }
 0x1b5   : > { %v1736_v38 = vsel %vm958_vm3, %v1728_v26, %v1598_v56  ;;  %v1737_v35 = vsel %vm958_vm3, %v1729_v50, %v1600_v16 }
 0x1b8   : > { %v3459_v9 = vpop.permute.xlu1 %1601  ;;  %v1620_v22 = vpop.permute.xlu0 %1619 }
 0x1b9   : > { %v1739_v18 = vsel %vm967_vm4, %v1731_v0, %v1620_v22 }
 0x1bc   : > { %v1622_v2 = vpop.permute.xlu1 %1621  ;;  %v1624_v40 = vpop.permute.xlu0 %1623 }
 0x1bd   : > { %v1740_v12 = vsel %vm967_vm4, %v1732_v43, %v1622_v2  ;;  %v1741_v24 = vsel %vm967_vm4, %v1733_v23, %v1624_v40 }
 0x1c0   : > { %v1626_v28 = vpop.permute.xlu1 %1625  ;;  %v1628_v57 = vpop.permute.xlu0 %1627 }
 0x1c1   : > { %v1742_v33 = vsel %vm967_vm4, %v1734_v51, %v1626_v28  ;;  %v1743_v14 = vsel %vm967_vm4, %v1735_v62, %v1628_v57 }
 0x1c4   : > { %v1630_v61 = vpop.permute.xlu1 %1629  ;;  %v1632_v21 = vpop.permute.xlu0 %1631 }
 0x1c5   : > { %v1744_v6 = vsel %vm967_vm4, %v1736_v38, %v1630_v61  ;;  %v1730_v61 = vsel %vm949_vm2, %v3451_v32, %v3457_v13 }
 0x1c6   : > { %v1738_v32 = vsel %vm958_vm3, %v1730_v61, %v3459_v9  ;;  %v1910_v61 = vsub.f32 %v3416_v55, %v1906_v53 }
 0x1c8   : > { %v3461_v47 = vpop.permute.xlu1 %1633  ;;  %v1652_v29 = vpop.permute.xlu0 %1651 }
 0x1c9   : > { %v1747_v44 = vsel %vm976_vm5, %v1739_v18, %v1652_v29 }
 0x1cc   : > { %v1654_v17 = vpop.permute.xlu1 %1653  ;;  %v1656_v27 = vpop.permute.xlu0 %1655 }
 0x1cd   : > { %v1748_v20 = vsel %vm976_vm5, %v1740_v12, %v1654_v17  ;;  %v1749_v31 = vsel %vm976_vm5, %v1741_v24, %v1656_v27  ;;  %v1745_v27 = vsel %vm967_vm4, %v1737_v35, %v1632_v21  ;;  %v1909_v35 = vsub.f32 %v3394_v60, %v1889_v3 }
 0x1d0   : > { %v1658_v63 = vpop.permute.xlu1 %1657  ;;  %v1660_v1 = vpop.permute.xlu0 %1659 }
 0x1d1   : > { %v1750_v22 = vsel %vm976_vm5, %v1742_v33, %v1658_v63  ;;  %v1751_v54 = vsel %vm976_vm5, %v1743_v14, %v1660_v1 }
 0x1d4   : > { %v1662_v45 = vpop.permute.xlu1 %1661  ;;  %v1664_v52 = vpop.permute.xlu0 %1663 }
 0x1d5   : > { %v1752_v63 = vsel %vm976_vm5, %v1744_v6, %v1662_v45  ;;  %v1753_v0 = vsel %vm976_vm5, %v1745_v27, %v1664_v52  ;;  %v1746_v52 = vsel %vm967_vm4, %v1738_v32, %v3461_v47 }
 0x1d8   : > { %v1666_v34 = vpop.permute.xlu1 %1665  ;;  %v1684_v10 = vpop.permute.xlu0 %1683 }
 0x1d9   : > { %v1755_v41 = vsel %vm985_vm6, %v1747_v44, %v1684_v10 }
 0x1da   : > { %v1766_v8 = vrot.slane %v1755_v41, %v3703_v30 }
 0x1dc   : > { %v1686_v25 = vpop.permute.xlu1 %1685  ;;  %v1688_v11 = vpop.permute.xlu0 %1687  ;;  %v2188_v4 = vadd.f32 -128.0, %v1766_v8 }
 0x1dd   : > { %v1756_v49 = vsel %vm985_vm6, %v1748_v20, %v1686_v25  ;;  %v1757_v39 = vsel %vm985_vm6, %v1749_v31, %v1688_v11  ;;  %v1754_v20 = vsel %vm976_vm5, %v1746_v52, %v1666_v34 }
 0x1de   : > { %v1770_v37 = vrot.slane %v1756_v49, %v3703_v30  ;;  %v1774_v58 = vrot.slane %v1757_v39, %v3703_v30  ;;  %v1803_v40 = vmul.f32 1.402, %v2188_v4  ;;  %v1911_v56 = vmul.f32 0.714136, %v2188_v4 }
 0x1e0   : > { %v2189_v2 = vadd.f32 -128.0, %v1770_v37  ;;  %v1690_v7 = vpop.permute.xlu1 %1689  ;;  %v1692_v48 = vpop.permute.xlu0 %1691  ;;  %v2190_v29 = vadd.f32 -128.0, %v1774_v58 }
 0x1e1   : > { %v1758_v17 = vsel %vm985_vm6, %v1750_v22, %v1690_v7  ;;  %v1759_v26 = vsel %vm985_vm6, %v1751_v54, %v1692_v48 }
 0x1e2   : > { %v1804_v16 = vmul.f32 1.402, %v2189_v2  ;;  %v1912_v28 = vmul.f32 0.714136, %v2189_v2  ;;  %v1778_v57 = vrot.slane %v1758_v17, %v3703_v30  ;;  %v1782_v1 = vrot.slane %v1759_v26, %v3703_v30 }
 0x1e3   : > { %v1805_v43 = vmul.f32 1.402, %v2190_v29  ;;  %v1913_v23 = vmul.f32 0.714136, %v2190_v29 }
 0x1e4   : > { %v1819_v18 = vcombine.low %v1803_v40, %v1804_v16  ;;  %v1927_v44 = vcombine.low %v1911_v56, %v1912_v28  ;;  %v2191_v10 = vadd.f32 -128.0, %v1778_v57  ;;  %v1694_v46 = vpop.permute.xlu1 %1693  ;;  %v1696_v41 = vpop.permute.xlu0 %1695  ;;  %v2192_v45 = vadd.f32 -128.0, %v1782_v1 }
 0x1e5   : > { %v1760_v8 = vsel %vm985_vm6, %v1752_v63, %v1694_v46  ;;  %v1761_v12 = vsel %vm985_vm6, %v1753_v0, %v1696_v41 }
 0x1e6   : > { %v1806_v13 = vmul.f32 1.402, %v2191_v10  ;;  %v1914_v21 = vmul.f32 0.714136, %v2191_v10  ;;  %v1786_v24 = vrot.slane %v1760_v8, %v3703_v30  ;;  %v1790_v36 = vrot.slane %v1761_v12, %v3703_v30 }
 0x1e7   : > { %v1827_v31 = vrot.slane %v1819_v18, %v3708_v15  ;;  %v1935_v4 = vrot.slane %v1927_v44, %v3708_v15  ;;  %v1807_v62 = vmul.f32 1.402, %v2192_v45  ;;  %v1915_v58 = vmul.f32 0.714136, %v2192_v45 }
 0x1e8   : > { %v1820_v25 = vcombine.low %v1805_v43, %v1806_v13  ;;  %v1928_v11 = vcombine.low %v1913_v23, %v1914_v21  ;;  %v1698_v50 = vpop.permute.xlu1 %1697  ;;  %v2193_v9 = vadd.f32 -128.0, %v1786_v24  ;;  %v2194_v49 = vadd.f32 -128.0, %v1790_v36 }
 0x1e9   : > { %v1762_v39 = vsel %vm985_vm6, %v1754_v20, %v1698_v50 }
 0x1ea   : > { %v1834_v51 = vrot.slane %v1820_v25, %v3708_v15  ;;  %v1942_v47 = vrot.slane %v1928_v11, %v3708_v15  ;;  %v1794_v37 = vrot.slane %v1762_v39, %v3703_v30  ;;  %v1808_v34 = vmul.f32 1.402, %v2193_v9 }
 0x1eb   : > { %v1916_v38 = vmul.f32 0.714136, %v2193_v9  ;;  %v1809_v2 = vmul.f32 1.402, %v2194_v49  ;;  %v1917_v7 = vmul.f32 0.714136, %v2194_v49 }
 0x1ec   : > { %v1835_v33 = vcombine.low %v1827_v31, %v1834_v51  ;;  %v1943_v14 = vcombine.low %v1935_v4, %v1942_v47  ;;  %v2195_v6 = vadd.f32 -128.0, %v1794_v37  ;;  %v1836_v22 = vcombine.low %v1807_v62, %v1808_v34 }
 0x1ed   : > { %v1944_v54 = vcombine.low %v1915_v58, %v1916_v38 }
 0x1ee   : > { %v1855_v48 = vadd.f32 %v1835_v33, %v3394_v60  ;;  %v1963_v40 = vsub.f32 %v1909_v35, %v1943_v14  ;;  %v1810_v29 = vmul.f32 1.402, %v2195_v6  ;;  %v1918_v30 = vmul.f32 0.714136, %v2195_v6 }
 0x1ef   : > { %v1844_v59 = vrot.slane %v1836_v22, %v3708_v15  ;;  %v1952_v3 = vrot.slane %v1944_v54, %v3708_v15 }
 0x1f0   : > { %v2019_v17 = vmax.f32 %v1855_v48, 0.0  ;;  %v2028_v26 = vmax.f32 %v1963_v40, 0.0  ;;  %v1837_v56 = vcombine.low %v1809_v2, %v1810_v29  ;;  %v1945_v42 = vcombine.low %v1917_v7, %v1918_v30 }
 0x1f2   : > { %v2021_v16 = vmin.f32 %v2019_v17, 255.0  ;;  %v2030_v28 = vmin.f32 %v2028_v26, 255.0  ;;  %v1851_v57 = vrot.slane %v1837_v56, %v3708_v15  ;;  %v1959_v60 = vrot.slane %v1945_v42, %v3708_v15 }
 0x1f4   : > { %v2023_v27 = vmul.f32 0.003921569, %v2021_v16  ;;  %v2032_v63 = vmul.f32 0.003921569, %v2030_v28  ;;  %v1852_v1 = vcombine.low %v1844_v59, %v1851_v57  ;;  %v1960_v0 = vcombine.low %v1952_v3, %v1959_v60 }
 0x1f6   : > { %2026 = vst.msk [vmem:[%s3420_s30] sm:$0xff] %vm2025_vm7, %v2023_v27  ;;  %2196 = vst.msk [vmem:[%s3420_s30 + $0x10] sm:$0xff] %vm2025_vm7, %v2032_v63  ;;  %v1856_v18 = vadd.f32 %v1852_v1, %v3416_v55  ;;  %v1964_v44 = vsub.f32 %v1910_v61, %v1960_v0 }
 0x1f8   : > { %v2020_v15 = vmax.f32 %v1856_v18, 0.0  ;;  %v2029_v10 = vmax.f32 %v1964_v44, 0.0 }
 0x1fa   : > { %v2022_v19 = vmin.f32 %v2020_v15, 255.0  ;;  %v2031_v5 = vmin.f32 %v2029_v10, 255.0 }
 0x1fc   : > { %v2024_v53 = vmul.f32 0.003921569, %v2022_v19  ;;  %v2033_v46 = vmul.f32 0.003921569, %v2031_v5 }
 0x1fe   : > { %2027 = vst.msk [vmem:[%s3420_s30 + $0x8] sm:$0xff] %vm2025_vm7, %v2024_v53  ;;  %2197 = vst.msk [vmem:[%s3420_s30 + $0x18] sm:$0xff] %vm2025_vm7, %v2033_v46 }
 0x1ff   : > { %2285 = shalt.err (!%p2282_p5)
}
 0x200   : > { %s2286_s21 = scalar_lea.hbm %s3538_s8, 768  ;;  %s2290_s27 = scalar_lea.hbm %s3597_s3, 1536 }
 0x201   : > { %p2287_p6 = scmp.ne.s32.totalorder %s3538_s8, %s2286_s21  ;;  %p2291_p10 = scmp.lt.s32.totalorder %s3538_s8, %s3597_s3 }
 0x202   : > { %p2292_p11 = scmp.lt.s32.totalorder %s2290_s27, %s2286_s21 }
 0x203   : > { %p2288_p7 = pnand %p2287_p6, %p2422_p4 }
 0x204   : > { %p2293_p12 = por %p2292_p11, %p2291_p10 }
 0x205   : > { %p2289_p9 = pneg %p2288_p7 }
 0x207   : > { %p2294_p13 = pnand %p2293_p12, %p2289_p9 }
 0x209   : > { %2297 = shalt.err (!%p2294_p13)
}
 0x20a   : > { %s2361_s30 = smov 128  }
 0x20b   : > { %2206 = dma.vmem_to_hbm [thread:$0]  (%p2422_p4), %s3540_s5, 768, %s3538_s8, %s3548_s15, %s2361_s30, %s2361_s30, %s2355_s9  }
 0x20c PF: > { %p2212_p0 = scmp.ge.s32.totalorder %s2348_s17, 2  ;;  %s2077_s4 = sand.u32 1, %s2328_s12  }
 0x20d   : > { %s2078_s6 = scalar_lea.sflag [#allocation3], %s2077_s4 }
 0x20e   : > { %p2209_p1 = pnand %p2212_p0, %p2429_p8 }
 0x210   : > { %p2210_p2 = pneg %p2209_p1 }
 0x212   : > { %2323 = dma.done.wait (%p2210_p2), %s2078_s6, 768  }
 0x213   : > { %2325 = vsyncadd (%p2210_p2), %s2078_s6, 4294966528  ;;  %s16_s17 = sadd.s32 1, %s2348_s17   ;;  %s3713_s12 = smov %s2332_s13 }
 0x214   : > { %p13_p3 = scmp.ge.s32.totalorder %s16_s17, 4   ;;  %s3714_s13 = smov %s2336_s14 }
 0x215   : > { %s3715_s14 = smov %s2435_s25  ;;  %s3716_s15 = smov %s2344_s16 }
 0x216   : > { %s3717_s16 = smov %s3719_s20  ;;  %15 = sbr.rel (!%p13_p3) target bundleno = 4 (0x4), region = 75 }
 0x21b   :  { %2083 = vsyncpa [#allocation3], 1 }
 0x21c   :  { %2085 = vsyncpa [#allocation3 + $0x1], 1 }

</bundles_post_ra>
